<compile_context>
chip_gen: v7x
topology: tpu7x:2x2x1
jax: 0.10.0
libtpu: 0.0.40
codegen_flags: <defaults>
</compile_context>

<pallas_src>
import functools

import jax
import jax.numpy as jnp
from jax import lax
from jax.experimental import pallas as pl
from jax.experimental.pallas import tpu as pltpu


def _round_up(n, m):
    return ((n + m - 1) // m) * m


def _pad_to(a, shape):
    pads = [(0, t - s) for s, t in zip(a.shape, shape)]
    return jnp.pad(a, pads)


def _mlp_kernel(x_ref, w1_ref, b1_ref, w2_ref, b2_ref, w3_ref, b3_ref, o_ref,
                *, num_classes):
    # fc1 + relu (bf16 MXU, f32 accumulate)
    h1 = jnp.dot(x_ref[...], w1_ref[...], preferred_element_type=jnp.float32) + b1_ref[...]
    h1 = jnp.maximum(h1, 0.0).astype(jnp.bfloat16)
    # fc2 + relu
    h2 = jnp.dot(h1, w2_ref[...], preferred_element_type=jnp.float32) + b2_ref[...]
    h2 = jnp.maximum(h2, 0.0).astype(jnp.bfloat16)
    # fc3 (class dim padded to 128 lanes for a dense store)
    logits = jnp.dot(h2, w3_ref[...], preferred_element_type=jnp.float32) + b3_ref[...]
    # mask padded class columns so they contribute nothing to the softmax
    col = lax.broadcasted_iota(jnp.int32, logits.shape, 1)
    logits = jnp.where(col < num_classes, logits, -jnp.inf)
    # log_softmax over classes (max-stabilized)
    m = jnp.max(logits, axis=-1, keepdims=True)
    shifted = logits - m
    lse = jnp.log(jnp.sum(jnp.exp(shifted), axis=-1, keepdims=True))
    o_ref[...] = shifted - lse


def model_engine1_forward(x, w1, b1, w2, b2, w3, b3, *, tb=256):
    """x: (B, input_size) f32; w_i pre-transposed (in, out); b_i (1, out). Returns (B, num_classes) f32."""
    batch, input_size = x.shape
    hidden_size = w1.shape[1]
    num_classes = w3.shape[1]

    # Padded (lane-aligned) dims.
    in_p = _round_up(input_size, 128)       # 784 -> 896
    h_p = _round_up(hidden_size, 128)       # 500 -> 512
    c_p = _round_up(num_classes, 128)       # 10  -> 128
    tb = min(tb, _round_up(batch, 8))       # small batches: single small tile
    b_p = _round_up(batch, tb)

    # Zero-pad + cast matmul operands to bf16 (biases stay f32).
    xb = _pad_to(x, (b_p, in_p)).astype(jnp.bfloat16)
    w1b = _pad_to(w1, (in_p, h_p)).astype(jnp.bfloat16)
    w2b = _pad_to(w2, (h_p, h_p)).astype(jnp.bfloat16)
    w3b = _pad_to(w3, (h_p, c_p)).astype(jnp.bfloat16)
    b1p = _pad_to(b1, (1, h_p))
    b2p = _pad_to(b2, (1, h_p))
    b3p = _pad_to(b3, (1, c_p))

    grid = (b_p // tb,)

    flops = 2 * batch * (input_size * hidden_size + hidden_size * hidden_size
                         + hidden_size * num_classes)
    bytes_accessed = (2 * (in_p * h_p + h_p * h_p + h_p * c_p)          # bf16 weights
                      + 4 * (2 * h_p + c_p)                              # f32 biases
                      + b_p * (2 * in_p + 4 * c_p))                      # bf16 x + f32 out
    cost = pl.CostEstimate(flops=flops,
                           transcendentals=batch * (num_classes + 1),
                           bytes_accessed=bytes_accessed)

    out_p = pl.pallas_call(
        functools.partial(_mlp_kernel, num_classes=num_classes),
        out_shape=jax.ShapeDtypeStruct((b_p, c_p), jnp.float32),
        grid=grid,
        in_specs=[
            pl.BlockSpec((tb, in_p), lambda i: (i, 0)),   # x tile (pipelined over batch)
            pl.BlockSpec((in_p, h_p), lambda i: (0, 0)),  # w1: VMEM-resident
            pl.BlockSpec((1, h_p), lambda i: (0, 0)),     # b1
            pl.BlockSpec((h_p, h_p), lambda i: (0, 0)),   # w2
            pl.BlockSpec((1, h_p), lambda i: (0, 0)),     # b2
            pl.BlockSpec((h_p, c_p), lambda i: (0, 0)),   # w3
            pl.BlockSpec((1, c_p), lambda i: (0, 0)),     # b3
        ],
        out_specs=pl.BlockSpec((tb, c_p), lambda i: (i, 0)),
        compiler_params=pltpu.CompilerParams(
            dimension_semantics=("parallel",)),           # 2x on v7x dual TensorCores
        cost_estimate=cost,
    )(xb, w1b, b1p, w2b, b2p, w3b, b3p)

    return out_p[:batch, :num_classes]


def init_params(key, input_size=784, hidden_size=500, num_classes=10):
    """Deterministic PyTorch-Linear-style init (uniform(-1/sqrt(fan_in), 1/sqrt(fan_in)))."""
    ks = jax.random.split(key, 6)

    def linear(kw, kb, fan_in, fan_out):
        bound = 1.0 / (fan_in ** 0.5)
        # stored transposed: (in, out)
        w = jax.random.uniform(kw, (fan_in, fan_out), jnp.float32, -bound, bound)
        b = jax.random.uniform(kb, (1, fan_out), jnp.float32, -bound, bound)
        return w, b

    w1, b1 = linear(ks[0], ks[1], input_size, hidden_size)
    w2, b2 = linear(ks[2], ks[3], hidden_size, hidden_size)
    w3, b3 = linear(ks[4], ks[5], hidden_size, num_classes)
    return w1, b1, w2, b2, w3, b3


if __name__ == "__main__":
    key = jax.random.PRNGKey(0)
    k_x, k_p = jax.random.split(key)

    batch = 8
    input_size, hidden_size, num_classes = 784, 500, 10

    x = jax.random.normal(k_x, (batch, input_size), dtype=jnp.float32)
    params = init_params(k_p, input_size, hidden_size, num_classes)

    out = model_engine1_forward(x, *params)
    out = jax.block_until_ready(out)
    assert out.shape == (batch, num_classes)

    # sanity: log_softmax rows should sum (in prob space) to ~1
    row_sums = jnp.sum(jnp.exp(out), axis=1)
    assert bool(jnp.all(jnp.abs(row_sums - 1.0) < 1e-4))

    # reference 1: emulate the kernel's bf16-MXU / f32-accumulate path in plain JAX
    w1, b1, w2, b2, w3, b3 = params
    xb = x.astype(jnp.bfloat16)
    w1b, w2b, w3b = (w.astype(jnp.bfloat16) for w in (w1, w2, w3))
    h = jnp.maximum(jnp.dot(xb, w1b, preferred_element_type=jnp.float32) + b1, 0.0)
    h = jnp.maximum(jnp.dot(h.astype(jnp.bfloat16), w2b,
                            preferred_element_type=jnp.float32) + b2, 0.0)
    logits_bf = jnp.dot(h.astype(jnp.bfloat16), w3b,
                        preferred_element_type=jnp.float32) + b3
    ref_bf = logits_bf - jax.scipy.special.logsumexp(logits_bf, axis=1, keepdims=True)
    assert bool(jnp.max(jnp.abs(out - ref_bf)) < 2e-3)

    # reference 2: full f32 math (loose tolerance covers bf16 matmul rounding)
    hf = jnp.maximum(x @ w1 + b1, 0.0)
    hf = jnp.maximum(hf @ w2 + b2, 0.0)
    logits_f = hf @ w3 + b3
    ref_f = logits_f - jax.scipy.special.logsumexp(logits_f, axis=1, keepdims=True)
    assert bool(jnp.max(jnp.abs(out - ref_f)) < 5e-2)

    print("KERNEL_OK")
</pallas_src>

<mosaic_0001>
module attributes {stable_mosaic.version = 11 : i64} {
  func.func @_mlp_kernel(%arg0: i32, %arg1: memref<8x896xbf16, #tpu.memory_space<vmem>>, %arg2: memref<896x512xbf16, #tpu.memory_space<vmem>>, %arg3: memref<1x512xf32, #tpu.memory_space<vmem>>, %arg4: memref<512x512xbf16, #tpu.memory_space<vmem>>, %arg5: memref<1x512xf32, #tpu.memory_space<vmem>>, %arg6: memref<512x128xbf16, #tpu.memory_space<vmem>>, %arg7: memref<1x128xf32, #tpu.memory_space<vmem>>, %arg8: memref<8x128xf32, #tpu.memory_space<vmem>>) attributes {dimension_semantics = [#tpu.dimension_semantics<parallel>], iteration_bounds = array<i64: 1>, scalar_prefetch = 0 : i64, scratch_operands = 0 : i64, tpu.core_type = #tpu.core_type<tc>, window_params = [{transform_indices = @transform_0, window_bounds = array<i64: 8, 896>}, {pipeline_mode = #tpu.pipeline_mode<synchronous>, transform_indices = @transform_1, window_bounds = array<i64: 896, 512>}, {pipeline_mode = #tpu.pipeline_mode<synchronous>, transform_indices = @transform_2, window_bounds = array<i64: 1, 512>}, {pipeline_mode = #tpu.pipeline_mode<synchronous>, transform_indices = @transform_3, window_bounds = array<i64: 512, 512>}, {pipeline_mode = #tpu.pipeline_mode<synchronous>, transform_indices = @transform_4, window_bounds = array<i64: 1, 512>}, {pipeline_mode = #tpu.pipeline_mode<synchronous>, transform_indices = @transform_5, window_bounds = array<i64: 512, 128>}, {pipeline_mode = #tpu.pipeline_mode<synchronous>, transform_indices = @transform_6, window_bounds = array<i64: 1, 128>}, {transform_indices = @transform_7, window_bounds = array<i64: 8, 128>}]} {
    %c0 = arith.constant 0 : index
    %c0_0 = arith.constant 0 : index
    %0 = vector.load %arg1[%c0, %c0_0] : memref<8x896xbf16, #tpu.memory_space<vmem>>, vector<8x896xbf16>
    %c0_1 = arith.constant 0 : index
    %c0_2 = arith.constant 0 : index
    %1 = vector.load %arg2[%c0_1, %c0_2] : memref<896x512xbf16, #tpu.memory_space<vmem>>, vector<896x512xbf16>
    %cst = arith.constant dense<0.000000e+00> : vector<8x512xf32>
    %2 = tpu.matmul %0, %1, %cst {dimension_numbers = #tpu.dot_dimension_numbers<[1], [0], [0], [1], [0, 0, 1, 1], [], []>} : vector<8x896xbf16>, vector<896x512xbf16>, vector<8x512xf32> -> vector<8x512xf32>
    %c0_3 = arith.constant 0 : index
    %c0_4 = arith.constant 0 : index
    %3 = vector.load %arg3[%c0_3, %c0_4] : memref<1x512xf32, #tpu.memory_space<vmem>>, vector<1x512xf32>
    %4 = vector.broadcast %3 : vector<1x512xf32> to vector<8x512xf32>
    %5 = arith.addf %2, %4 : vector<8x512xf32>
    %cst_5 = arith.constant 0.000000e+00 : f32
    %6 = vector.broadcast %cst_5 : f32 to vector<8x512xf32>
    %7 = arith.maximumf %5, %6 : vector<8x512xf32>
    %8 = arith.truncf %7 : vector<8x512xf32> to vector<8x512xbf16>
    %c0_6 = arith.constant 0 : index
    %c0_7 = arith.constant 0 : index
    %9 = vector.load %arg4[%c0_6, %c0_7] : memref<512x512xbf16, #tpu.memory_space<vmem>>, vector<512x512xbf16>
    %cst_8 = arith.constant dense<0.000000e+00> : vector<8x512xf32>
    %10 = tpu.matmul %8, %9, %cst_8 {dimension_numbers = #tpu.dot_dimension_numbers<[1], [0], [0], [1], [0, 0, 1, 1], [], []>} : vector<8x512xbf16>, vector<512x512xbf16>, vector<8x512xf32> -> vector<8x512xf32>
    %c0_9 = arith.constant 0 : index
    %c0_10 = arith.constant 0 : index
    %11 = vector.load %arg5[%c0_9, %c0_10] : memref<1x512xf32, #tpu.memory_space<vmem>>, vector<1x512xf32>
    %12 = vector.broadcast %11 : vector<1x512xf32> to vector<8x512xf32>
    %13 = arith.addf %10, %12 : vector<8x512xf32>
    %cst_11 = arith.constant 0.000000e+00 : f32
    %14 = vector.broadcast %cst_11 : f32 to vector<8x512xf32>
    %15 = arith.maximumf %13, %14 : vector<8x512xf32>
    %16 = arith.truncf %15 : vector<8x512xf32> to vector<8x512xbf16>
    %c0_12 = arith.constant 0 : index
    %c0_13 = arith.constant 0 : index
    %17 = vector.load %arg6[%c0_12, %c0_13] : memref<512x128xbf16, #tpu.memory_space<vmem>>, vector<512x128xbf16>
    %cst_14 = arith.constant dense<0.000000e+00> : vector<8x128xf32>
    %18 = tpu.matmul %16, %17, %cst_14 {dimension_numbers = #tpu.dot_dimension_numbers<[1], [0], [0], [1], [0, 0, 1, 1], [], []>} : vector<8x512xbf16>, vector<512x128xbf16>, vector<8x128xf32> -> vector<8x128xf32>
    %c0_15 = arith.constant 0 : index
    %c0_16 = arith.constant 0 : index
    %19 = vector.load %arg7[%c0_15, %c0_16] : memref<1x128xf32, #tpu.memory_space<vmem>>, vector<1x128xf32>
    %20 = vector.broadcast %19 : vector<1x128xf32> to vector<8x128xf32>
    %21 = arith.addf %18, %20 : vector<8x128xf32>
    %22 = tpu.iota {dimensions = array<i32: 1>} : vector<8x128xi32>
    %c10_i32 = arith.constant 10 : i32
    %23 = vector.broadcast %c10_i32 : i32 to vector<8x128xi32>
    %24 = arith.cmpi slt, %22, %23 : vector<8x128xi32>
    %cst_17 = arith.constant 0xFF800000 : f32
    %25 = vector.broadcast %cst_17 : f32 to vector<8x128xf32>
    %26 = arith.select %24, %21, %25 : vector<8x128xi1>, vector<8x128xf32>
    %cst_18 = arith.constant dense<0xFF800000> : vector<8xf32>
    %27 = vector.multi_reduction <maximumf>, %26, %cst_18 [1] : vector<8x128xf32> to vector<8xf32>
    %28 = vector.shape_cast %27 : vector<8xf32> to vector<8x1xf32>
    %29 = vector.broadcast %28 : vector<8x1xf32> to vector<8x128xf32>
    %30 = arith.subf %26, %29 : vector<8x128xf32>
    %31 = math.exp %30 : vector<8x128xf32>
    %cst_19 = arith.constant dense<0.000000e+00> : vector<8xf32>
    %32 = vector.multi_reduction <add>, %31, %cst_19 [1] : vector<8x128xf32> to vector<8xf32>
    %33 = vector.shape_cast %32 : vector<8xf32> to vector<8x1xf32>
    %34 = math.log %33 : vector<8x1xf32>
    %35 = vector.broadcast %34 : vector<8x1xf32> to vector<8x128xf32>
    %36 = arith.subf %30, %35 : vector<8x128xf32>
    %c0_20 = arith.constant 0 : index
    %c0_21 = arith.constant 0 : index
    %37 = vector.load %arg8[%c0_20, %c0_21] : memref<8x128xf32, #tpu.memory_space<vmem>>, vector<8x128xf32>
    tpu.vector_store %arg8[%c0_20, %c0_21], %36 {strides = array<i32>} : memref<8x128xf32, #tpu.memory_space<vmem>>, vector<8x128xf32>,
    return
  }
  func.func @transform_0(%arg0: i32) -> (i32, i32) {
    %c0_i32 = arith.constant 0 : i32
    %c0_i32_0 = arith.constant 0 : i32
    return %arg0, %c0_i32 : i32, i32
  }
  func.func @transform_1(%arg0: i32) -> (i32, i32) {
    %c0_i32 = arith.constant 0 : i32
    %c0_i32_0 = arith.constant 0 : i32
    %c0_i32_1 = arith.constant 0 : i32
    return %c0_i32, %c0_i32_0 : i32, i32
  }
  func.func @transform_2(%arg0: i32) -> (i32, i32) {
    %c0_i32 = arith.constant 0 : i32
    %c0_i32_0 = arith.constant 0 : i32
    %c0_i32_1 = arith.constant 0 : i32
    return %c0_i32, %c0_i32_0 : i32, i32
  }
  func.func @transform_3(%arg0: i32) -> (i32, i32) {
    %c0_i32 = arith.constant 0 : i32
    %c0_i32_0 = arith.constant 0 : i32
    %c0_i32_1 = arith.constant 0 : i32
    return %c0_i32, %c0_i32_0 : i32, i32
  }
  func.func @transform_4(%arg0: i32) -> (i32, i32) {
    %c0_i32 = arith.constant 0 : i32
    %c0_i32_0 = arith.constant 0 : i32
    %c0_i32_1 = arith.constant 0 : i32
    return %c0_i32, %c0_i32_0 : i32, i32
  }
  func.func @transform_5(%arg0: i32) -> (i32, i32) {
    %c0_i32 = arith.constant 0 : i32
    %c0_i32_0 = arith.constant 0 : i32
    %c0_i32_1 = arith.constant 0 : i32
    return %c0_i32, %c0_i32_0 : i32, i32
  }
  func.func @transform_6(%arg0: i32) -> (i32, i32) {
    %c0_i32 = arith.constant 0 : i32
    %c0_i32_0 = arith.constant 0 : i32
    %c0_i32_1 = arith.constant 0 : i32
    return %c0_i32, %c0_i32_0 : i32, i32
  }
  func.func @transform_7(%arg0: i32) -> (i32, i32) {
    %c0_i32 = arith.constant 0 : i32
    %c0_i32_0 = arith.constant 0 : i32
    return %arg0, %c0_i32 : i32, i32
  }
}

</mosaic_0001>

<bundles_post_ra>
// kernel: tpu_custom_call.1
= control target key start
LH: loop header
LB: loop body
LE: loop exit
PB: predicated region body
PF: predicated region fallthrough
CT: control target
= control target key end

     0   :  { %12 = vsyncpa [#allocation3], 0  ;;  %s4494_s0 = inlined_call_operand.hbm [shape: bf16[8,896], index: 0, kind: input, shape index: {}]   ;;  %s4495_s1 = inlined_call_operand.hbm [shape: bf16[896,512], index: 1, kind: input, shape index: {}]   ;;  %s4496_s2 = inlined_call_operand.vmem [shape: f32[1,512], index: 2, kind: input, shape index: {}]   ;;  %s4497_s3 = inlined_call_operand.hbm [shape: bf16[512,512], index: 3, kind: input, shape index: {}]   ;;  %s4498_s4 = inlined_call_operand.vmem [shape: f32[1,512], index: 4, kind: input, shape index: {}]   ;;  %s4499_s5 = inlined_call_operand.hbm [shape: bf16[512,128], index: 5, kind: input, shape index: {}]   ;;  %s4500_s6 = inlined_call_operand.vmem [shape: f32[1,128], index: 6, kind: input, shape index: {}]   ;;  %s4501_s7 = inlined_call_operand.hbm [shape: f32[8,128], index: 7, kind: output, shape index: {}]  }
   0x1   :  { %13 = vsyncpa [#allocation6], 0 }
   0x2   :  { %14 = vsyncpa [#allocation9], 0 }
   0x3   :  { %15 = vsyncpa [#allocation4], 0  ;;  %s4324_s24 = smov [#allocation5]   ;;  %s4206_s28 = scalar_lea.hbm %s4495_s1, 28672 }
   0x4   :  { %s31_s25 = sshll.u32 %s4324_s24, 4  ;;  %p4207_p0 = scmp.ne.s32.totalorder %s4495_s1, %s4206_s28  ;;  %s32_s25 = int_to_ptr.vmem [resolvable:$true] %s31_s25 }
   0x5   :  { %p4210_p1 = scmp.lt.u32.totalorder %s4206_s28, %s4495_s1 }
   0x7   :  { %p4212_p2 = pnand %p4210_p1, %p4207_p0 }
   0x9   :  { %4215 = shalt.err (!%p4212_p2)
}
   0xa   :  { %s4216_s10 = scalar_lea.vmem %s32_s25, 28672  ;;  %p4221_p4 = scmp.lt.s32.totalorder %s32_s25, %s32_s25 }
   0xb   :  { %p4217_p3 = scmp.ne.s32.totalorder %s32_s25, %s4216_s10  ;;  %p4222_p5 = scmp.lt.s32.totalorder %s4216_s10, %s4216_s10 }
   0xd   :  { %p4223_p6 = por %p4222_p5, %p4221_p4 }
   0xf   :  { %p4224_p7 = pnand %p4223_p6, %p4217_p3 }
  0x11   :  { %4227 = shalt.err (!%p4224_p7)
}
  0x12   :  { %s4325_s11 = smov 256   ;;  %s4326_s12 = smov 16  }
  0x13   :  { %37 = dma.hbm_to_vmem [thread:$0]  %s4495_s1, 28672, %s32_s25, [#allocation6], %s4325_s11, %s4325_s11, %s4326_s12  }
  0x14   :  { %s4327_s15 = smov [#allocation2]   ;;  %s4328_s17 = smov [#allocation7]  }
  0x15   :  { %s22_s16 = sshll.u32 %s4327_s15, 4  ;;  %s45_s18 = sshll.u32 %s4328_s17, 4  ;;  %s23_s16 = int_to_ptr.vmem [resolvable:$true] %s22_s16  ;;  %s46_s18 = int_to_ptr.vmem [resolvable:$true] %s45_s18 }
  0x16   :  { %s4228_s21 = scalar_lea.hbm %s4494_s0, 448 }
  0x17   :  { %p4229_p8 = scmp.ne.s32.totalorder %s4494_s0, %s4228_s21  ;;  %p4232_p9 = scmp.lt.u32.totalorder %s4228_s21, %s4494_s0 }
  0x19   :  { %p4234_p10 = pnand %p4232_p9, %p4229_p8 }
  0x1b   :  { %4237 = shalt.err (!%p4234_p10)
}
  0x1c   :  { %s4238_s1 = scalar_lea.vmem %s23_s16, 448  ;;  %p4243_p12 = scmp.lt.s32.totalorder %s23_s16, %s23_s16 }
  0x1d   :  { %p4239_p11 = scmp.ne.s32.totalorder %s23_s16, %s4238_s1  ;;  %p4244_p13 = scmp.lt.s32.totalorder %s4238_s1, %s4238_s1 }
  0x1f   :  { %p4245_p0 = por %p4244_p13, %p4243_p12 }
  0x21   :  { %p4246_p1 = pnand %p4245_p0, %p4239_p11 }
  0x23   :  { %4249 = shalt.err (!%p4246_p1)
}
  0x24   :  { %25 = dma.hbm_to_vmem [thread:$0]  %s4494_s0, 448, %s23_s16, [#allocation3]  }
  0x25   :  { %s4250_s30 = scalar_lea.hbm %s4497_s3, 16384 }
  0x26   :  { %p4251_p2 = scmp.ne.s32.totalorder %s4497_s3, %s4250_s30  ;;  %p4254_p3 = scmp.lt.u32.totalorder %s4250_s30, %s4497_s3 }
  0x28   :  { %p4256_p4 = pnand %p4254_p3, %p4251_p2 }
  0x2a   :  { %4259 = shalt.err (!%p4256_p4)
}
  0x2b   :  { %s4260_s14 = scalar_lea.vmem %s46_s18, 16384  ;;  %p4265_p6 = scmp.lt.s32.totalorder %s46_s18, %s46_s18 }
  0x2c   :  { %p4261_p5 = scmp.ne.s32.totalorder %s46_s18, %s4260_s14  ;;  %p4266_p7 = scmp.lt.s32.totalorder %s4260_s14, %s4260_s14 }
  0x2e   :  { %p4267_p8 = por %p4266_p7, %p4265_p6 }
  0x30   :  { %p4268_p9 = pnand %p4267_p8, %p4261_p5 }
  0x32   :  { %4271 = shalt.err (!%p4268_p9)
}
  0x33   :  { %51 = dma.hbm_to_vmem [thread:$0]  %s4497_s3, 16384, %s46_s18, [#allocation6], %s4325_s11, %s4325_s11, %s4326_s12  }
  0x34   :  { %s4329_s16 = smov [#allocation8]   ;;  %s4272_s21 = scalar_lea.hbm %s4499_s5, 4096 }
  0x35   :  { %s59_s17 = sshll.u32 %s4329_s16, 4  ;;  %p4273_p10 = scmp.ne.s32.totalorder %s4499_s5, %s4272_s21  ;;  %s60_s17 = int_to_ptr.vmem [resolvable:$true] %s59_s17 }
  0x36   :  { %p4276_p11 = scmp.lt.u32.totalorder %s4272_s21, %s4499_s5 }
  0x38   :  { %p4278_p12 = pnand %p4276_p11, %p4273_p10 }
  0x3a   :  { %4281 = shalt.err (!%p4278_p12)
}
  0x3b   :  { %s4282_s1 = scalar_lea.vmem %s60_s17, 4096  ;;  %p4287_p0 = scmp.lt.s32.totalorder %s60_s17, %s60_s17 }
  0x3c   :  { %p4283_p13 = scmp.ne.s32.totalorder %s60_s17, %s4282_s1  ;;  %p4288_p1 = scmp.lt.s32.totalorder %s4282_s1, %s4282_s1 }
  0x3e   :  { %p4289_p2 = por %p4288_p1, %p4287_p0 }
  0x40   :  { %p4290_p3 = pnand %p4289_p2, %p4283_p13 }
  0x42   :  { %4293 = shalt.err (!%p4290_p3)
}
  0x43   :  { %s4330_s3 = smov 64   ;;  %s4331_s11 = smov 4  }
  0x44   :  { %65 = dma.hbm_to_vmem [thread:$0]  %s4499_s5, 4096, %s60_s17, [#allocation9], %s4330_s3, %s4330_s3, %s4331_s11  }
  0x45   :  { %4316 = dma.done.wait [#allocation3], 448  }
  0x46   :  { %4317 = vsyncadd [#allocation3], 4294966848 }
  0x47   :  { %4318 = dma.done.wait [#allocation6], 45056  }
  0x48   :  { %4319 = vsyncadd [#allocation6], 4294922240 }
  0x49   :  { %4320 = dma.done.wait [#allocation9], 4096  }
  0x4a   :  { %4321 = vsyncadd [#allocation9], 4294963200  ;;  %v3635_v0 = vld [vmem:[#allocation5 + $0x4] ss:$16 sps:$4 sm:$0xff]   ;;  %v3637_v1 = vld [vmem:[#allocation5 + $0xc] ss:$16 sps:$4 sm:$0xff]  }
  0x4b   :  { %1476 = vmatprep.subr.bf16.mxu0 %v3635_v0  ;;  %v3639_v2 = vld [vmem:[#allocation5] ss:$16 sps:$4 sm:$0xff]   ;;  %v3640_v3 = vld [vmem:[#allocation5 + $0x8] ss:$16 sps:$4 sm:$0xff]   ;;  %1640 = vmatprep.subr.bf16.mxu1 %v3637_v1  ;;  %v3641_v4 = vld [vmem:[#allocation5 + $0x24] ss:$16 sps:$4 sm:$0xff]  }
  0x4c   :  { %1477 = vmatpush1.bf16.msra.mxu0 %v3639_v2  ;;  %1641 = vmatpush1.bf16.msra.mxu1 %v3640_v3  ;;  %v3643_v5 = vld [vmem:[#allocation5 + $0x2c] ss:$16 sps:$4 sm:$0xff]   ;;  %v3645_v6 = vld [vmem:[#allocation5 + $0x20] ss:$16 sps:$4 sm:$0xff]   ;;  %v3646_v7 = vld [vmem:[#allocation5 + $0x28] ss:$16 sps:$4 sm:$0xff]  }
  0x4d   :  { %1478 = vmatprep.subr.bf16.mxu0 %v3641_v4  ;;  %1642 = vmatprep.subr.bf16.mxu1 %v3643_v5  ;;  %v3647_v8 = vld [vmem:[#allocation5 + $0x44] ss:$16 sps:$4 sm:$0xff]   ;;  %v3649_v9 = vld [vmem:[#allocation5 + $0x4c] ss:$16 sps:$4 sm:$0xff]   ;;  %v3651_v10 = vld [vmem:[#allocation5 + $0x40] ss:$16 sps:$4 sm:$0xff]  }
  0x4e   :  { %v3652_v11 = vld [vmem:[#allocation5 + $0x48] ss:$16 sps:$4 sm:$0xff]   ;;  %v3653_v12 = vld [vmem:[#allocation5 + $0x64] ss:$16 sps:$4 sm:$0xff]   ;;  %v3655_v13 = vld [vmem:[#allocation5 + $0x6c] ss:$16 sps:$4 sm:$0xff]  }
  0x4f   :  { %v3657_v14 = vld [vmem:[#allocation5 + $0x60] ss:$16 sps:$4 sm:$0xff]   ;;  %v3658_v15 = vld [vmem:[#allocation5 + $0x68] ss:$16 sps:$4 sm:$0xff]   ;;  %v3659_v16 = vld [vmem:[#allocation5 + $0x84] ss:$16 sps:$4 sm:$0xff]  }
  0x50   :  { %1479 = vmatpush1.bf16.msra.mxu0 %v3645_v6  ;;  %1643 = vmatpush1.bf16.msra.mxu1 %v3646_v7  ;;  %v3661_v17 = vld [vmem:[#allocation5 + $0x8c] ss:$16 sps:$4 sm:$0xff]   ;;  %v3663_v18 = vld [vmem:[#allocation5 + $0x80] ss:$16 sps:$4 sm:$0xff]   ;;  %v3664_v19 = vld [vmem:[#allocation5 + $0x88] ss:$16 sps:$4 sm:$0xff]  }
  0x51   :  { %1480 = vmatprep.subr.bf16.mxu0 %v3647_v8  ;;  %1644 = vmatprep.subr.bf16.mxu1 %v3649_v9  ;;  %v3665_v20 = vld [vmem:[#allocation5 + $0xa4] ss:$16 sps:$4 sm:$0xff]   ;;  %v3667_v21 = vld [vmem:[#allocation5 + $0xac] ss:$16 sps:$4 sm:$0xff]   ;;  %v3669_v22 = vld [vmem:[#allocation5 + $0xa0] ss:$16 sps:$4 sm:$0xff]  }
  0x52   :  { %v3670_v23 = vld [vmem:[#allocation5 + $0xa8] ss:$16 sps:$4 sm:$0xff]   ;;  %v3671_v24 = vld [vmem:[#allocation5 + $0xc4] ss:$16 sps:$4 sm:$0xff]   ;;  %v3673_v25 = vld [vmem:[#allocation5 + $0xcc] ss:$16 sps:$4 sm:$0xff]  }
  0x53   :  { %v3675_v26 = vld [vmem:[#allocation5 + $0xc0] ss:$16 sps:$4 sm:$0xff]   ;;  %v3676_v27 = vld [vmem:[#allocation5 + $0xc8] ss:$16 sps:$4 sm:$0xff]   ;;  %v3677_v28 = vld [vmem:[#allocation5 + $0xe4] ss:$16 sps:$4 sm:$0xff]  }
  0x54   :  { %1481 = vmatpush1.bf16.msra.mxu0 %v3651_v10  ;;  %1645 = vmatpush1.bf16.msra.mxu1 %v3652_v11  ;;  %v3679_v29 = vld [vmem:[#allocation5 + $0xec] ss:$16 sps:$4 sm:$0xff]   ;;  %v3681_v30 = vld [vmem:[#allocation5 + $0xe0] ss:$16 sps:$4 sm:$0xff]   ;;  %v3682_v31 = vld [vmem:[#allocation5 + $0xe8] ss:$16 sps:$4 sm:$0xff]  }
  0x55   :  { %1482 = vmatprep.subr.bf16.mxu0 %v3653_v12  ;;  %1646 = vmatprep.subr.bf16.mxu1 %v3655_v13  ;;  %v3683_v32 = vld [vmem:[#allocation5 + $0x104] ss:$16 sps:$4 sm:$0xff]   ;;  %v3685_v33 = vld [vmem:[#allocation5 + $0x10c] ss:$16 sps:$4 sm:$0xff]   ;;  %v3687_v34 = vld [vmem:[#allocation5 + $0x100] ss:$16 sps:$4 sm:$0xff]  }
  0x56   :  { %v3688_v35 = vld [vmem:[#allocation5 + $0x108] ss:$16 sps:$4 sm:$0xff]   ;;  %v3689_v36 = vld [vmem:[#allocation5 + $0x124] ss:$16 sps:$4 sm:$0xff]   ;;  %v3691_v37 = vld [vmem:[#allocation5 + $0x12c] ss:$16 sps:$4 sm:$0xff]  }
  0x57   :  { %v3693_v38 = vld [vmem:[#allocation5 + $0x120] ss:$16 sps:$4 sm:$0xff]   ;;  %v3694_v39 = vld [vmem:[#allocation5 + $0x128] ss:$16 sps:$4 sm:$0xff]   ;;  %v3695_v40 = vld [vmem:[#allocation5 + $0x144] ss:$16 sps:$4 sm:$0xff]  }
  0x58   :  { %1483 = vmatpush1.bf16.msra.mxu0 %v3657_v14  ;;  %1647 = vmatpush1.bf16.msra.mxu1 %v3658_v15  ;;  %v3697_v41 = vld [vmem:[#allocation5 + $0x14c] ss:$16 sps:$4 sm:$0xff]   ;;  %v3699_v42 = vld [vmem:[#allocation5 + $0x140] ss:$16 sps:$4 sm:$0xff]   ;;  %v3700_v43 = vld [vmem:[#allocation5 + $0x148] ss:$16 sps:$4 sm:$0xff]  }
  0x59   :  { %1484 = vmatprep.subr.bf16.mxu0 %v3659_v16  ;;  %1648 = vmatprep.subr.bf16.mxu1 %v3661_v17  ;;  %v3701_v44 = vld [vmem:[#allocation5 + $0x164] ss:$16 sps:$4 sm:$0xff]   ;;  %v3703_v45 = vld [vmem:[#allocation5 + $0x16c] ss:$16 sps:$4 sm:$0xff]   ;;  %v3705_v47 = vld [vmem:[#allocation5 + $0x160] ss:$16 sps:$4 sm:$0xff]  }
  0x5a   :  { %v81_v46 = vld [vmem:[#allocation2] sm:$0xff]  ;;  %v3709_v51 = vld [vmem:[#allocation5 + $0x18c] ss:$16 sps:$4 sm:$0xff]   ;;  %v3711_v52 = vld [vmem:[#allocation5 + $0x180] ss:$16 sps:$4 sm:$0xff]  }
  0x5b   :  { %v3150_v48 = vcombine.high %v81_v46, %v81_v46  ;;  %v3706_v49 = vld [vmem:[#allocation5 + $0x168] ss:$16 sps:$4 sm:$0xff]   ;;  %v3707_v50 = vld [vmem:[#allocation5 + $0x184] ss:$16 sps:$4 sm:$0xff]   ;;  %v3715_v55 = vld [vmem:[#allocation5 + $0x1ac] ss:$16 sps:$4 sm:$0xff]   ;;  %v3149_v4 = vcombine.low %v81_v46, %v81_v46 }
  0x5c   :  { %1485 = vmatpush1.bf16.msra.mxu0 %v3663_v18  ;;  %1649 = vmatpush1.bf16.msra.mxu1 %v3664_v19  ;;  %v3712_v53 = vld [vmem:[#allocation5 + $0x188] ss:$16 sps:$4 sm:$0xff]   ;;  %v3713_v54 = vld [vmem:[#allocation5 + $0x1a4] ss:$16 sps:$4 sm:$0xff]   ;;  %v3717_v56 = vld [vmem:[#allocation5 + $0x1a0] ss:$16 sps:$4 sm:$0xff]  }
  0x5d   :  { %1486 = vmatprep.subr.bf16.mxu0 %v3665_v20  ;;  %1650 = vmatprep.subr.bf16.mxu1 %v3667_v21  ;;  %v3718_v57 = vld [vmem:[#allocation5 + $0x1a8] ss:$16 sps:$4 sm:$0xff]   ;;  %v3719_v58 = vld [vmem:[#allocation5 + $0x1c4] ss:$16 sps:$4 sm:$0xff]   ;;  %v3721_v59 = vld [vmem:[#allocation5 + $0x1cc] ss:$16 sps:$4 sm:$0xff]  }
  0x5e   :  { %1508 = vmatprep.mubr.bf16.mxu0 %v3150_v48  ;;  %1672 = vmatprep.mubr.bf16.mxu1 %v3150_v48  ;;  %v3723_v60 = vld [vmem:[#allocation5 + $0x1c0] ss:$16 sps:$4 sm:$0xff]   ;;  %v3724_v61 = vld [vmem:[#allocation5 + $0x1c8] ss:$16 sps:$4 sm:$0xff]   ;;  %v3725_v62 = vld [vmem:[#allocation5 + $0x1e4] ss:$16 sps:$4 sm:$0xff]  }
  0x5f   :  { %v3727_v63 = vld [vmem:[#allocation5 + $0x1ec] ss:$16 sps:$4 sm:$0xff]   ;;  %v3729_v0 = vld [vmem:[#allocation5 + $0x1e0] ss:$16 sps:$4 sm:$0xff]   ;;  %v3730_v1 = vld [vmem:[#allocation5 + $0x1e8] ss:$16 sps:$4 sm:$0xff]  }
  0x60   :  { %1487 = vmatpush1.bf16.msra.mxu0 %v3669_v22  ;;  %1651 = vmatpush1.bf16.msra.mxu1 %v3670_v23  ;;  %v3735_v2 = vld [vmem:[#allocation5 + $0x204] ss:$16 sps:$4 sm:$0xff]   ;;  %v3738_v3 = vld [vmem:[#allocation5 + $0x20c] ss:$16 sps:$4 sm:$0xff]   ;;  %v3733_v5 = vld [vmem:[#allocation5 + $0x200] ss:$16 sps:$4 sm:$0xff]  }
  0x61   :  { %1488 = vmatprep.subr.bf16.mxu0 %v3671_v24  ;;  %1652 = vmatprep.subr.bf16.mxu1 %v3673_v25  ;;  %v3736_v6 = vld [vmem:[#allocation5 + $0x208] ss:$16 sps:$4 sm:$0xff]   ;;  %v3741_v7 = vld [vmem:[#allocation5 + $0x224] ss:$16 sps:$4 sm:$0xff]   ;;  %v3744_v8 = vld [vmem:[#allocation5 + $0x22c] ss:$16 sps:$4 sm:$0xff]  }
  0x62   :  { %v3739_v9 = vld [vmem:[#allocation5 + $0x220] ss:$16 sps:$4 sm:$0xff]   ;;  %v3742_v10 = vld [vmem:[#allocation5 + $0x228] ss:$16 sps:$4 sm:$0xff]   ;;  %v3747_v11 = vld [vmem:[#allocation5 + $0x244] ss:$16 sps:$4 sm:$0xff]  }
  0x63   :  { %v3750_v12 = vld [vmem:[#allocation5 + $0x24c] ss:$16 sps:$4 sm:$0xff]   ;;  %v3745_v13 = vld [vmem:[#allocation5 + $0x240] ss:$16 sps:$4 sm:$0xff]   ;;  %v3748_v14 = vld [vmem:[#allocation5 + $0x248] ss:$16 sps:$4 sm:$0xff]  }
  0x64   :  { %1489 = vmatpush1.bf16.msra.mxu0 %v3675_v26  ;;  %1653 = vmatpush1.bf16.msra.mxu1 %v3676_v27  ;;  %v3753_v15 = vld [vmem:[#allocation5 + $0x264] ss:$16 sps:$4 sm:$0xff]   ;;  %v3756_v16 = vld [vmem:[#allocation5 + $0x26c] ss:$16 sps:$4 sm:$0xff]   ;;  %v3751_v17 = vld [vmem:[#allocation5 + $0x260] ss:$16 sps:$4 sm:$0xff]  }
  0x65   :  { %1490 = vmatprep.subr.bf16.mxu0 %v3677_v28  ;;  %1654 = vmatprep.subr.bf16.mxu1 %v3679_v29  ;;  %v3754_v18 = vld [vmem:[#allocation5 + $0x268] ss:$16 sps:$4 sm:$0xff]   ;;  %v3759_v19 = vld [vmem:[#allocation5 + $0x284] ss:$16 sps:$4 sm:$0xff]   ;;  %v3762_v20 = vld [vmem:[#allocation5 + $0x28c] ss:$16 sps:$4 sm:$0xff]  }
  0x66   :  { %v3757_v21 = vld [vmem:[#allocation5 + $0x280] ss:$16 sps:$4 sm:$0xff]   ;;  %v3760_v22 = vld [vmem:[#allocation5 + $0x288] ss:$16 sps:$4 sm:$0xff]   ;;  %v3765_v23 = vld [vmem:[#allocation5 + $0x2a4] ss:$16 sps:$4 sm:$0xff]  }
  0x67   :  { %v3768_v24 = vld [vmem:[#allocation5 + $0x2ac] ss:$16 sps:$4 sm:$0xff]   ;;  %v3763_v25 = vld [vmem:[#allocation5 + $0x2a0] ss:$16 sps:$4 sm:$0xff]   ;;  %v3766_v26 = vld [vmem:[#allocation5 + $0x2a8] ss:$16 sps:$4 sm:$0xff]  }
  0x68   :  { %1491 = vmatpush1.bf16.msra.mxu0 %v3681_v30  ;;  %1655 = vmatpush1.bf16.msra.mxu1 %v3682_v31  ;;  %v3771_v27 = vld [vmem:[#allocation5 + $0x2c4] ss:$16 sps:$4 sm:$0xff]   ;;  %v3774_v28 = vld [vmem:[#allocation5 + $0x2cc] ss:$16 sps:$4 sm:$0xff]   ;;  %v3769_v31 = vld [vmem:[#allocation5 + $0x2c0] ss:$16 sps:$4 sm:$0xff]  }
  0x69   :  { %1492 = vmatprep.subr.bf16.mxu0 %v3683_v32  ;;  %1656 = vmatprep.subr.bf16.mxu1 %v3685_v33  ;;  %v4428_v29 = vld [vmem:[#allocation2 + $0x8] sm:$0xff]  ;;  %v3772_v32 = vld [vmem:[#allocation5 + $0x2c8] ss:$16 sps:$4 sm:$0xff]   ;;  %v3777_v33 = vld [vmem:[#allocation5 + $0x2e4] ss:$16 sps:$4 sm:$0xff]  }
  0x6a   :  { %v3152_v30 = vcombine.high %v4428_v29, %v4428_v29  ;;  %v3798_v46 = vld [vmem:[#allocation5 + $0x34c] ss:$16 sps:$4 sm:$0xff]   ;;  %v3796_v48 = vld [vmem:[#allocation5 + $0x348] ss:$16 sps:$4 sm:$0xff]  }
  0x6c   :  { %1493 = vmatpush1.bf16.msra.mxu0 %v3687_v34  ;;  %1657 = vmatpush1.bf16.msra.mxu1 %v3688_v35  ;;  %v3780_v34 = vld [vmem:[#allocation5 + $0x2ec] ss:$16 sps:$4 sm:$0xff]   ;;  %v3775_v35 = vld [vmem:[#allocation5 + $0x2e0] ss:$16 sps:$4 sm:$0xff]  }
  0x6d   :  { %1494 = vmatprep.subr.bf16.mxu0 %v3689_v36  ;;  %1658 = vmatprep.subr.bf16.mxu1 %v3691_v37  ;;  %v3778_v36 = vld [vmem:[#allocation5 + $0x2e8] ss:$16 sps:$4 sm:$0xff]   ;;  %v3783_v37 = vld [vmem:[#allocation5 + $0x304] ss:$16 sps:$4 sm:$0xff]  }
  0x70   :  { %1495 = vmatpush1.bf16.msra.mxu0 %v3693_v38  ;;  %1659 = vmatpush1.bf16.msra.mxu1 %v3694_v39  ;;  %v3786_v38 = vld [vmem:[#allocation5 + $0x30c] ss:$16 sps:$4 sm:$0xff]   ;;  %v3781_v39 = vld [vmem:[#allocation5 + $0x300] ss:$16 sps:$4 sm:$0xff]  }
  0x71   :  { %1496 = vmatprep.subr.bf16.mxu0 %v3695_v40  ;;  %1660 = vmatprep.subr.bf16.mxu1 %v3697_v41  ;;  %v3784_v40 = vld [vmem:[#allocation5 + $0x308] ss:$16 sps:$4 sm:$0xff]   ;;  %v3789_v41 = vld [vmem:[#allocation5 + $0x324] ss:$16 sps:$4 sm:$0xff]  }
  0x74   :  { %1497 = vmatpush1.bf16.msra.mxu0 %v3699_v42  ;;  %1661 = vmatpush1.bf16.msra.mxu1 %v3700_v43  ;;  %v3792_v42 = vld [vmem:[#allocation5 + $0x32c] ss:$16 sps:$4 sm:$0xff]   ;;  %v3787_v43 = vld [vmem:[#allocation5 + $0x320] ss:$16 sps:$4 sm:$0xff]  }
  0x75   :  { %1498 = vmatprep.subr.bf16.mxu0 %v3701_v44  ;;  %1662 = vmatprep.subr.bf16.mxu1 %v3703_v45  ;;  %v3790_v44 = vld [vmem:[#allocation5 + $0x328] ss:$16 sps:$4 sm:$0xff]   ;;  %v3795_v45 = vld [vmem:[#allocation5 + $0x344] ss:$16 sps:$4 sm:$0xff]  }
  0x78   :  { %1499 = vmatpush1.bf16.msra.mxu0 %v3705_v47  ;;  %1663 = vmatpush1.bf16.msra.mxu1 %v3706_v49  ;;  %v3793_v47 = vld [vmem:[#allocation5 + $0x340] ss:$16 sps:$4 sm:$0xff]   ;;  %v3801_v49 = vld [vmem:[#allocation5 + $0x364] ss:$16 sps:$4 sm:$0xff]  }
  0x79   :  { %1500 = vmatprep.subr.bf16.mxu0 %v3707_v50  ;;  %1664 = vmatprep.subr.bf16.mxu1 %v3709_v51  ;;  %v3804_v50 = vld [vmem:[#allocation5 + $0x36c] ss:$16 sps:$4 sm:$0xff]   ;;  %v3799_v51 = vld [vmem:[#allocation5 + $0x360] ss:$16 sps:$4 sm:$0xff]  }
  0x7c   :  { %1501 = vmatpush1.bf16.msra.mxu0 %v3711_v52  ;;  %1665 = vmatpush1.bf16.msra.mxu1 %v3712_v53  ;;  %v3802_v52 = vld [vmem:[#allocation5 + $0x368] ss:$16 sps:$4 sm:$0xff]   ;;  %v3807_v53 = vld [vmem:[#allocation5 + $0x384] ss:$16 sps:$4 sm:$0xff]  }
  0x7d   :  { %1502 = vmatprep.subr.bf16.mxu0 %v3713_v54  ;;  %1666 = vmatprep.subr.bf16.mxu1 %v3715_v55  ;;  %v3810_v54 = vld [vmem:[#allocation5 + $0x38c] ss:$16 sps:$4 sm:$0xff]   ;;  %v3805_v55 = vld [vmem:[#allocation5 + $0x380] ss:$16 sps:$4 sm:$0xff]  }
  0x80   :  { %1503 = vmatpush1.bf16.msra.mxu0 %v3717_v56  ;;  %1667 = vmatpush1.bf16.msra.mxu1 %v3718_v57  ;;  %v3808_v56 = vld [vmem:[#allocation5 + $0x388] ss:$16 sps:$4 sm:$0xff]   ;;  %v3813_v57 = vld [vmem:[#allocation5 + $0x3a4] ss:$16 sps:$4 sm:$0xff]  }
  0x81   :  { %1504 = vmatprep.subr.bf16.mxu0 %v3719_v58  ;;  %1668 = vmatprep.subr.bf16.mxu1 %v3721_v59  ;;  %v3816_v58 = vld [vmem:[#allocation5 + $0x3ac] ss:$16 sps:$4 sm:$0xff]   ;;  %v3811_v59 = vld [vmem:[#allocation5 + $0x3a0] ss:$16 sps:$4 sm:$0xff]  }
  0x84   :  { %1505 = vmatpush1.bf16.msra.mxu0 %v3723_v60  ;;  %1669 = vmatpush1.bf16.msra.mxu1 %v3724_v61  ;;  %v3814_v60 = vld [vmem:[#allocation5 + $0x3a8] ss:$16 sps:$4 sm:$0xff]   ;;  %v3819_v61 = vld [vmem:[#allocation5 + $0x3c4] ss:$16 sps:$4 sm:$0xff]  }
  0x85   :  { %1506 = vmatprep.subr.bf16.mxu0 %v3725_v62  ;;  %1670 = vmatprep.subr.bf16.mxu1 %v3727_v63  ;;  %v3822_v62 = vld [vmem:[#allocation5 + $0x3cc] ss:$16 sps:$4 sm:$0xff]   ;;  %v3817_v63 = vld [vmem:[#allocation5 + $0x3c0] ss:$16 sps:$4 sm:$0xff]  }
  0x88   :  { %1507 = vmatpush1.bf16.msra.mxu0 %v3729_v0  ;;  %1671 = vmatpush1.bf16.msra.mxu1 %v3730_v1  ;;  %v3820_v0 = vld [vmem:[#allocation5 + $0x3c8] ss:$16 sps:$4 sm:$0xff]   ;;  %v3825_v1 = vld [vmem:[#allocation5 + $0x3e4] ss:$16 sps:$4 sm:$0xff]  }
  0x89   :  { %1517 = vmatprep.subr.bf16.mxu0 %v3735_v2  ;;  %1681 = vmatprep.subr.bf16.mxu1 %v3738_v3  ;;  %v3828_v2 = vld [vmem:[#allocation5 + $0x3ec] ss:$16 sps:$4 sm:$0xff]   ;;  %v3823_v3 = vld [vmem:[#allocation5 + $0x3e0] ss:$16 sps:$4 sm:$0xff]  }
  0x8b   :  { %1509 = vmatmul.mubr.bf16.vlgmr.msra.gmra.mrb[0].mxu0 %v3149_v4  ;;  %1673 = vmatmul.mubr.bf16.vlgmr.msra.gmra.mrb[0].mxu1 %v3149_v4  ;;  %v3826_v4 = vld [vmem:[#allocation5 + $0x3e8] ss:$16 sps:$4 sm:$0xff]  }
  0x8c   :  { %1518 = vmatpush1.bf16.msra.mxu0 %v3733_v5  ;;  %1682 = vmatpush1.bf16.msra.mxu1 %v3736_v6  ;;  %v3833_v5 = vld [vmem:[#allocation5 + $0x404] ss:$16 sps:$4 sm:$0xff]   ;;  %v3836_v6 = vld [vmem:[#allocation5 + $0x40c] ss:$16 sps:$4 sm:$0xff]  }
  0x8d   :  { %1519 = vmatprep.subr.bf16.mxu0 %v3741_v7  ;;  %1683 = vmatprep.subr.bf16.mxu1 %v3744_v8  ;;  %v3151_v7 = vcombine.low %v4428_v29, %v4428_v29  ;;  %v3831_v8 = vld [vmem:[#allocation5 + $0x400] ss:$16 sps:$4 sm:$0xff]   ;;  %v3866_v29 = vld [vmem:[#allocation5 + $0x4ac] ss:$16 sps:$4 sm:$0xff]  }
  0x8e   :  { %1549 = vmatprep.mubr.bf16.mxu0 %v3152_v30  ;;  %1713 = vmatprep.mubr.bf16.mxu1 %v3152_v30  ;;  %v3861_v30 = vld [vmem:[#allocation5 + $0x4a0] ss:$16 sps:$4 sm:$0xff]  }
  0x90   :  { %1520 = vmatpush1.bf16.msra.mxu0 %v3739_v9  ;;  %1684 = vmatpush1.bf16.msra.mxu1 %v3742_v10  ;;  %v3834_v9 = vld [vmem:[#allocation5 + $0x408] ss:$16 sps:$4 sm:$0xff]   ;;  %v3839_v10 = vld [vmem:[#allocation5 + $0x424] ss:$16 sps:$4 sm:$0xff]  }
  0x91   :  { %1521 = vmatprep.subr.bf16.mxu0 %v3747_v11  ;;  %1685 = vmatprep.subr.bf16.mxu1 %v3750_v12  ;;  %v4434_v11 = vld [vmem:[#allocation2 + $0x10] sm:$0xff]  ;;  %v3842_v12 = vld [vmem:[#allocation5 + $0x42c] ss:$16 sps:$4 sm:$0xff]  }
  0x94   :  { %1522 = vmatpush1.bf16.msra.mxu0 %v3745_v13  ;;  %1686 = vmatpush1.bf16.msra.mxu1 %v3748_v14  ;;  %v3154_v13 = vcombine.high %v4434_v11, %v4434_v11  ;;  %v3837_v14 = vld [vmem:[#allocation5 + $0x420] ss:$16 sps:$4 sm:$0xff]  }
  0x95   :  { %1523 = vmatprep.subr.bf16.mxu0 %v3753_v15  ;;  %1687 = vmatprep.subr.bf16.mxu1 %v3756_v16  ;;  %v3840_v15 = vld [vmem:[#allocation5 + $0x428] ss:$16 sps:$4 sm:$0xff]   ;;  %v3845_v16 = vld [vmem:[#allocation5 + $0x444] ss:$16 sps:$4 sm:$0xff]  }
  0x98   :  { %1524 = vmatpush1.bf16.msra.mxu0 %v3751_v17  ;;  %1688 = vmatpush1.bf16.msra.mxu1 %v3754_v18  ;;  %v3848_v17 = vld [vmem:[#allocation5 + $0x44c] ss:$16 sps:$4 sm:$0xff]   ;;  %v3843_v18 = vld [vmem:[#allocation5 + $0x440] ss:$16 sps:$4 sm:$0xff]  }
  0x99   :  { %1525 = vmatprep.subr.bf16.mxu0 %v3759_v19  ;;  %1689 = vmatprep.subr.bf16.mxu1 %v3762_v20  ;;  %v3846_v19 = vld [vmem:[#allocation5 + $0x448] ss:$16 sps:$4 sm:$0xff]   ;;  %v3851_v20 = vld [vmem:[#allocation5 + $0x464] ss:$16 sps:$4 sm:$0xff]  }
  0x9c   :  { %1526 = vmatpush1.bf16.msra.mxu0 %v3757_v21  ;;  %1690 = vmatpush1.bf16.msra.mxu1 %v3760_v22  ;;  %v3854_v21 = vld [vmem:[#allocation5 + $0x46c] ss:$16 sps:$4 sm:$0xff]   ;;  %v3849_v22 = vld [vmem:[#allocation5 + $0x460] ss:$16 sps:$4 sm:$0xff]  }
  0x9d   :  { %1527 = vmatprep.subr.bf16.mxu0 %v3765_v23  ;;  %1691 = vmatprep.subr.bf16.mxu1 %v3768_v24  ;;  %v3852_v23 = vld [vmem:[#allocation5 + $0x468] ss:$16 sps:$4 sm:$0xff]   ;;  %v3857_v24 = vld [vmem:[#allocation5 + $0x484] ss:$16 sps:$4 sm:$0xff]  }
  0xa0   :  { %1528 = vmatpush1.bf16.msra.mxu0 %v3763_v25  ;;  %1692 = vmatpush1.bf16.msra.mxu1 %v3766_v26  ;;  %v3860_v25 = vld [vmem:[#allocation5 + $0x48c] ss:$16 sps:$4 sm:$0xff]   ;;  %v3855_v26 = vld [vmem:[#allocation5 + $0x480] ss:$16 sps:$4 sm:$0xff]  }
  0xa1   :  { %1529 = vmatprep.subr.bf16.mxu0 %v3771_v27  ;;  %1693 = vmatprep.subr.bf16.mxu1 %v3774_v28  ;;  %v3858_v27 = vld [vmem:[#allocation5 + $0x488] ss:$16 sps:$4 sm:$0xff]   ;;  %v3863_v28 = vld [vmem:[#allocation5 + $0x4a4] ss:$16 sps:$4 sm:$0xff]  }
  0xa4   :  { %1530 = vmatpush1.bf16.msra.mxu0 %v3769_v31  ;;  %1694 = vmatpush1.bf16.msra.mxu1 %v3772_v32  ;;  %v3864_v31 = vld [vmem:[#allocation5 + $0x4a8] ss:$16 sps:$4 sm:$0xff]   ;;  %v3869_v32 = vld [vmem:[#allocation5 + $0x4c4] ss:$16 sps:$4 sm:$0xff]  }
  0xa5   :  { %1531 = vmatprep.subr.bf16.mxu0 %v3777_v33  ;;  %1695 = vmatprep.subr.bf16.mxu1 %v3780_v34  ;;  %v3872_v33 = vld [vmem:[#allocation5 + $0x4cc] ss:$16 sps:$4 sm:$0xff]   ;;  %v3867_v34 = vld [vmem:[#allocation5 + $0x4c0] ss:$16 sps:$4 sm:$0xff]  }
  0xa8   :  { %1532 = vmatpush1.bf16.msra.mxu0 %v3775_v35  ;;  %1696 = vmatpush1.bf16.msra.mxu1 %v3778_v36  ;;  %v3870_v35 = vld [vmem:[#allocation5 + $0x4c8] ss:$16 sps:$4 sm:$0xff]   ;;  %v3875_v36 = vld [vmem:[#allocation5 + $0x4e4] ss:$16 sps:$4 sm:$0xff]  }
  0xa9   :  { %1533 = vmatprep.subr.bf16.mxu0 %v3783_v37  ;;  %1697 = vmatprep.subr.bf16.mxu1 %v3786_v38  ;;  %v3878_v37 = vld [vmem:[#allocation5 + $0x4ec] ss:$16 sps:$4 sm:$0xff]   ;;  %v3873_v38 = vld [vmem:[#allocation5 + $0x4e0] ss:$16 sps:$4 sm:$0xff]  }
  0xac   :  { %1534 = vmatpush1.bf16.msra.mxu0 %v3781_v39  ;;  %1698 = vmatpush1.bf16.msra.mxu1 %v3784_v40  ;;  %v3876_v39 = vld [vmem:[#allocation5 + $0x4e8] ss:$16 sps:$4 sm:$0xff]   ;;  %v3881_v40 = vld [vmem:[#allocation5 + $0x504] ss:$16 sps:$4 sm:$0xff]  }
  0xad   :  { %1535 = vmatprep.subr.bf16.mxu0 %v3789_v41  ;;  %1699 = vmatprep.subr.bf16.mxu1 %v3792_v42  ;;  %v3884_v41 = vld [vmem:[#allocation5 + $0x50c] ss:$16 sps:$4 sm:$0xff]   ;;  %v3879_v42 = vld [vmem:[#allocation5 + $0x500] ss:$16 sps:$4 sm:$0xff]  }
  0xb0   :  { %1536 = vmatpush1.bf16.msra.mxu0 %v3787_v43  ;;  %1700 = vmatpush1.bf16.msra.mxu1 %v3790_v44  ;;  %v3882_v43 = vld [vmem:[#allocation5 + $0x508] ss:$16 sps:$4 sm:$0xff]   ;;  %v3887_v44 = vld [vmem:[#allocation5 + $0x524] ss:$16 sps:$4 sm:$0xff]  }
  0xb1   :  { %1537 = vmatprep.subr.bf16.mxu0 %v3795_v45  ;;  %1701 = vmatprep.subr.bf16.mxu1 %v3798_v46  ;;  %v3890_v45 = vld [vmem:[#allocation5 + $0x52c] ss:$16 sps:$4 sm:$0xff]   ;;  %v3885_v46 = vld [vmem:[#allocation5 + $0x520] ss:$16 sps:$4 sm:$0xff]  }
  0xb4   :  { %1538 = vmatpush1.bf16.msra.mxu0 %v3793_v47  ;;  %1702 = vmatpush1.bf16.msra.mxu1 %v3796_v48  ;;  %v3888_v47 = vld [vmem:[#allocation5 + $0x528] ss:$16 sps:$4 sm:$0xff]   ;;  %v3893_v48 = vld [vmem:[#allocation5 + $0x544] ss:$16 sps:$4 sm:$0xff]  }
  0xb5   :  { %1539 = vmatprep.subr.bf16.mxu0 %v3801_v49  ;;  %1703 = vmatprep.subr.bf16.mxu1 %v3804_v50  ;;  %v3896_v49 = vld [vmem:[#allocation5 + $0x54c] ss:$16 sps:$4 sm:$0xff]   ;;  %v3891_v50 = vld [vmem:[#allocation5 + $0x540] ss:$16 sps:$4 sm:$0xff]  }
  0xb8   :  { %1540 = vmatpush1.bf16.msra.mxu0 %v3799_v51  ;;  %1704 = vmatpush1.bf16.msra.mxu1 %v3802_v52  ;;  %v3894_v51 = vld [vmem:[#allocation5 + $0x548] ss:$16 sps:$4 sm:$0xff]   ;;  %v3899_v52 = vld [vmem:[#allocation5 + $0x564] ss:$16 sps:$4 sm:$0xff]  }
  0xb9   :  { %1541 = vmatprep.subr.bf16.mxu0 %v3807_v53  ;;  %1705 = vmatprep.subr.bf16.mxu1 %v3810_v54  ;;  %v3902_v53 = vld [vmem:[#allocation5 + $0x56c] ss:$16 sps:$4 sm:$0xff]   ;;  %v3897_v54 = vld [vmem:[#allocation5 + $0x560] ss:$16 sps:$4 sm:$0xff]  }
  0xbc   :  { %1542 = vmatpush1.bf16.msra.mxu0 %v3805_v55  ;;  %1706 = vmatpush1.bf16.msra.mxu1 %v3808_v56  ;;  %v3900_v55 = vld [vmem:[#allocation5 + $0x568] ss:$16 sps:$4 sm:$0xff]   ;;  %v3905_v56 = vld [vmem:[#allocation5 + $0x584] ss:$16 sps:$4 sm:$0xff]  }
  0xbd   :  { %1543 = vmatprep.subr.bf16.mxu0 %v3813_v57  ;;  %1707 = vmatprep.subr.bf16.mxu1 %v3816_v58  ;;  %v3908_v57 = vld [vmem:[#allocation5 + $0x58c] ss:$16 sps:$4 sm:$0xff]   ;;  %v3903_v58 = vld [vmem:[#allocation5 + $0x580] ss:$16 sps:$4 sm:$0xff]  }
  0xc0   :  { %1544 = vmatpush1.bf16.msra.mxu0 %v3811_v59  ;;  %1708 = vmatpush1.bf16.msra.mxu1 %v3814_v60  ;;  %v3906_v59 = vld [vmem:[#allocation5 + $0x588] ss:$16 sps:$4 sm:$0xff]   ;;  %v3911_v60 = vld [vmem:[#allocation5 + $0x5a4] ss:$16 sps:$4 sm:$0xff]  }
  0xc1   :  { %1545 = vmatprep.subr.bf16.mxu0 %v3819_v61  ;;  %1709 = vmatprep.subr.bf16.mxu1 %v3822_v62  ;;  %v3914_v61 = vld [vmem:[#allocation5 + $0x5ac] ss:$16 sps:$4 sm:$0xff]   ;;  %v3909_v62 = vld [vmem:[#allocation5 + $0x5a0] ss:$16 sps:$4 sm:$0xff]  }
  0xc4   :  { %1546 = vmatpush1.bf16.msra.mxu0 %v3817_v63  ;;  %1710 = vmatpush1.bf16.msra.mxu1 %v3820_v0  ;;  %v3912_v63 = vld [vmem:[#allocation5 + $0x5a8] ss:$16 sps:$4 sm:$0xff]   ;;  %v3917_v0 = vld [vmem:[#allocation5 + $0x5c4] ss:$16 sps:$4 sm:$0xff]  }
  0xc5   :  { %1547 = vmatprep.subr.bf16.mxu0 %v3825_v1  ;;  %1711 = vmatprep.subr.bf16.mxu1 %v3828_v2  ;;  %v3920_v1 = vld [vmem:[#allocation5 + $0x5cc] ss:$16 sps:$4 sm:$0xff]   ;;  %v3915_v2 = vld [vmem:[#allocation5 + $0x5c0] ss:$16 sps:$4 sm:$0xff]  }
  0xc8   :  { %1548 = vmatpush1.bf16.msra.mxu0 %v3823_v3  ;;  %1712 = vmatpush1.bf16.msra.mxu1 %v3826_v4  ;;  %v3918_v3 = vld [vmem:[#allocation5 + $0x5c8] ss:$16 sps:$4 sm:$0xff]   ;;  %v3923_v4 = vld [vmem:[#allocation5 + $0x5e4] ss:$16 sps:$4 sm:$0xff]  }
  0xc9   :  { %1558 = vmatprep.subr.bf16.mxu0 %v3833_v5  ;;  %1722 = vmatprep.subr.bf16.mxu1 %v3836_v6  ;;  %v3926_v5 = vld [vmem:[#allocation5 + $0x5ec] ss:$16 sps:$4 sm:$0xff]   ;;  %v3921_v6 = vld [vmem:[#allocation5 + $0x5e0] ss:$16 sps:$4 sm:$0xff]  }
  0xcb   :  { %1550 = vmatmul.mubr.bf16.vlgmr.msra.gmra.mrb[0].mxu0 %v3151_v7  ;;  %1714 = vmatmul.mubr.bf16.vlgmr.msra.gmra.mrb[0].mxu1 %v3151_v7  ;;  %v3924_v7 = vld [vmem:[#allocation5 + $0x5e8] ss:$16 sps:$4 sm:$0xff]  }
  0xcc   :  { %1559 = vmatpush1.bf16.msra.mxu0 %v3831_v8  ;;  %1723 = vmatpush1.bf16.msra.mxu1 %v3834_v9  ;;  %v3931_v8 = vld [vmem:[#allocation5 + $0x604] ss:$16 sps:$4 sm:$0xff]   ;;  %v3934_v9 = vld [vmem:[#allocation5 + $0x60c] ss:$16 sps:$4 sm:$0xff]  }
  0xcd   :  { %1560 = vmatprep.subr.bf16.mxu0 %v3839_v10  ;;  %1724 = vmatprep.subr.bf16.mxu1 %v3842_v12  ;;  %v3929_v10 = vld [vmem:[#allocation5 + $0x600] ss:$16 sps:$4 sm:$0xff]   ;;  %v3932_v12 = vld [vmem:[#allocation5 + $0x608] ss:$16 sps:$4 sm:$0xff]  }
  0xce   :  { %1590 = vmatprep.mubr.bf16.mxu0 %v3154_v13  ;;  %1754 = vmatprep.mubr.bf16.mxu1 %v3154_v13  ;;  %v3153_v13 = vcombine.low %v4434_v11, %v4434_v11  ;;  %v3949_v11 = vld [vmem:[#allocation5 + $0x664] ss:$16 sps:$4 sm:$0xff]  }
  0xd0   :  { %1561 = vmatpush1.bf16.msra.mxu0 %v3837_v14  ;;  %1725 = vmatpush1.bf16.msra.mxu1 %v3840_v15  ;;  %v3937_v14 = vld [vmem:[#allocation5 + $0x624] ss:$16 sps:$4 sm:$0xff]   ;;  %v3940_v15 = vld [vmem:[#allocation5 + $0x62c] ss:$16 sps:$4 sm:$0xff]  }
  0xd1   :  { %1562 = vmatprep.subr.bf16.mxu0 %v3845_v16  ;;  %1726 = vmatprep.subr.bf16.mxu1 %v3848_v17  ;;  %v3935_v16 = vld [vmem:[#allocation5 + $0x620] ss:$16 sps:$4 sm:$0xff]   ;;  %v3938_v17 = vld [vmem:[#allocation5 + $0x628] ss:$16 sps:$4 sm:$0xff]  }
  0xd4   :  { %1563 = vmatpush1.bf16.msra.mxu0 %v3843_v18  ;;  %1727 = vmatpush1.bf16.msra.mxu1 %v3846_v19  ;;  %v3943_v18 = vld [vmem:[#allocation5 + $0x644] ss:$16 sps:$4 sm:$0xff]   ;;  %v3946_v19 = vld [vmem:[#allocation5 + $0x64c] ss:$16 sps:$4 sm:$0xff]  }
  0xd5   :  { %1564 = vmatprep.subr.bf16.mxu0 %v3851_v20  ;;  %1728 = vmatprep.subr.bf16.mxu1 %v3854_v21  ;;  %v3941_v20 = vld [vmem:[#allocation5 + $0x640] ss:$16 sps:$4 sm:$0xff]   ;;  %v3944_v21 = vld [vmem:[#allocation5 + $0x648] ss:$16 sps:$4 sm:$0xff]  }
  0xd8   :  { %1565 = vmatpush1.bf16.msra.mxu0 %v3849_v22  ;;  %1729 = vmatpush1.bf16.msra.mxu1 %v3852_v23  ;;  %v4332_v22 = vmov 0   ;;  %v3952_v23 = vld [vmem:[#allocation5 + $0x66c] ss:$16 sps:$4 sm:$0xff]  }
  0xd9   :  { %1566 = vmatprep.subr.bf16.mxu0 %v3857_v24  ;;  %1730 = vmatprep.subr.bf16.mxu1 %v3860_v25  ;;  %v3947_v24 = vld [vmem:[#allocation5 + $0x660] ss:$16 sps:$4 sm:$0xff]   ;;  %v3950_v25 = vld [vmem:[#allocation5 + $0x668] ss:$16 sps:$4 sm:$0xff]  }
  0xdc   :  { %1567 = vmatpush1.bf16.msra.mxu0 %v3855_v26  ;;  %1731 = vmatpush1.bf16.msra.mxu1 %v3858_v27  ;;  %v3955_v26 = vld [vmem:[#allocation5 + $0x684] ss:$16 sps:$4 sm:$0xff]   ;;  %v3958_v27 = vld [vmem:[#allocation5 + $0x68c] ss:$16 sps:$4 sm:$0xff]  }
  0xdd   :  { %1568 = vmatprep.subr.bf16.mxu0 %v3863_v28  ;;  %1732 = vmatprep.subr.bf16.mxu1 %v3866_v29  ;;  %v3953_v28 = vld [vmem:[#allocation5 + $0x680] ss:$16 sps:$4 sm:$0xff]   ;;  %v3956_v29 = vld [vmem:[#allocation5 + $0x688] ss:$16 sps:$4 sm:$0xff]  }
  0xe0   :  { %1569 = vmatpush1.bf16.msra.mxu0 %v3861_v30  ;;  %1733 = vmatpush1.bf16.msra.mxu1 %v3864_v31  ;;  %v3961_v30 = vld [vmem:[#allocation5 + $0x6a4] ss:$16 sps:$4 sm:$0xff]   ;;  %v3964_v31 = vld [vmem:[#allocation5 + $0x6ac] ss:$16 sps:$4 sm:$0xff]  }
  0xe1   :  { %1570 = vmatprep.subr.bf16.mxu0 %v3869_v32  ;;  %1734 = vmatprep.subr.bf16.mxu1 %v3872_v33  ;;  %v3959_v32 = vld [vmem:[#allocation5 + $0x6a0] ss:$16 sps:$4 sm:$0xff]   ;;  %v3962_v33 = vld [vmem:[#allocation5 + $0x6a8] ss:$16 sps:$4 sm:$0xff]  }
  0xe4   :  { %1571 = vmatpush1.bf16.msra.mxu0 %v3867_v34  ;;  %1735 = vmatpush1.bf16.msra.mxu1 %v3870_v35  ;;  %v3967_v34 = vld [vmem:[#allocation5 + $0x6c4] ss:$16 sps:$4 sm:$0xff]   ;;  %v3970_v35 = vld [vmem:[#allocation5 + $0x6cc] ss:$16 sps:$4 sm:$0xff]  }
  0xe5   :  { %1572 = vmatprep.subr.bf16.mxu0 %v3875_v36  ;;  %1736 = vmatprep.subr.bf16.mxu1 %v3878_v37  ;;  %v3965_v36 = vld [vmem:[#allocation5 + $0x6c0] ss:$16 sps:$4 sm:$0xff]   ;;  %v3968_v37 = vld [vmem:[#allocation5 + $0x6c8] ss:$16 sps:$4 sm:$0xff]  }
  0xe8   :  { %1573 = vmatpush1.bf16.msra.mxu0 %v3873_v38  ;;  %1737 = vmatpush1.bf16.msra.mxu1 %v3876_v39  ;;  %v3973_v38 = vld [vmem:[#allocation5 + $0x6e4] ss:$16 sps:$4 sm:$0xff]   ;;  %v3976_v39 = vld [vmem:[#allocation5 + $0x6ec] ss:$16 sps:$4 sm:$0xff]  }
  0xe9   :  { %1574 = vmatprep.subr.bf16.mxu0 %v3881_v40  ;;  %1738 = vmatprep.subr.bf16.mxu1 %v3884_v41  ;;  %v3971_v40 = vld [vmem:[#allocation5 + $0x6e0] ss:$16 sps:$4 sm:$0xff]   ;;  %v3974_v41 = vld [vmem:[#allocation5 + $0x6e8] ss:$16 sps:$4 sm:$0xff]  }
  0xec   :  { %1575 = vmatpush1.bf16.msra.mxu0 %v3879_v42  ;;  %1739 = vmatpush1.bf16.msra.mxu1 %v3882_v43  ;;  %v3980_v42 = vld [vmem:[#allocation7 + $0x4] ss:$16 sps:$4 sm:$0xff]   ;;  %v3983_v43 = vld [vmem:[#allocation7 + $0xc] ss:$16 sps:$4 sm:$0xff]  }
  0xed   :  { %1576 = vmatprep.subr.bf16.mxu0 %v3887_v44  ;;  %1740 = vmatprep.subr.bf16.mxu1 %v3890_v45  ;;  %v3977_v44 = vld [vmem:[#allocation2 + $0x18] ss:$0 sps:$4 sm:$0xff]   ;;  %v3978_v45 = vld [vmem:[#allocation7] ss:$16 sps:$4 sm:$0xff]  }
  0xf0   :  { %1577 = vmatpush1.bf16.msra.mxu0 %v3885_v46  ;;  %1741 = vmatpush1.bf16.msra.mxu1 %v3888_v47  ;;  %v3981_v46 = vld [vmem:[#allocation7 + $0x8] ss:$16 sps:$4 sm:$0xff]   ;;  %v3986_v47 = vld [vmem:[#allocation7 + $0x24] ss:$16 sps:$4 sm:$0xff]  }
  0xf1   :  { %1578 = vmatprep.subr.bf16.mxu0 %v3893_v48  ;;  %1742 = vmatprep.subr.bf16.mxu1 %v3896_v49  ;;  %v3989_v48 = vld [vmem:[#allocation7 + $0x2c] ss:$16 sps:$4 sm:$0xff]   ;;  %v3984_v49 = vld [vmem:[#allocation7 + $0x20] ss:$16 sps:$4 sm:$0xff]  }
  0xf4   :  { %1579 = vmatpush1.bf16.msra.mxu0 %v3891_v50  ;;  %1743 = vmatpush1.bf16.msra.mxu1 %v3894_v51  ;;  %v3987_v50 = vld [vmem:[#allocation7 + $0x28] ss:$16 sps:$4 sm:$0xff]   ;;  %v3992_v51 = vld [vmem:[#allocation7 + $0x44] ss:$16 sps:$4 sm:$0xff]  }
  0xf5   :  { %1580 = vmatprep.subr.bf16.mxu0 %v3899_v52  ;;  %1744 = vmatprep.subr.bf16.mxu1 %v3902_v53  ;;  %v3995_v52 = vld [vmem:[#allocation7 + $0x4c] ss:$16 sps:$4 sm:$0xff]   ;;  %v3990_v53 = vld [vmem:[#allocation7 + $0x40] ss:$16 sps:$4 sm:$0xff]  }
  0xf8   :  { %1581 = vmatpush1.bf16.msra.mxu0 %v3897_v54  ;;  %1745 = vmatpush1.bf16.msra.mxu1 %v3900_v55  ;;  %v3993_v54 = vld [vmem:[#allocation7 + $0x48] ss:$16 sps:$4 sm:$0xff]   ;;  %v3998_v55 = vld [vmem:[#allocation7 + $0x64] ss:$16 sps:$4 sm:$0xff]  }
  0xf9   :  { %1582 = vmatprep.subr.bf16.mxu0 %v3905_v56  ;;  %1746 = vmatprep.subr.bf16.mxu1 %v3908_v57  ;;  %v4001_v56 = vld [vmem:[#allocation7 + $0x6c] ss:$16 sps:$4 sm:$0xff]   ;;  %v3996_v57 = vld [vmem:[#allocation7 + $0x60] ss:$16 sps:$4 sm:$0xff]  }
  0xfc   :  { %1583 = vmatpush1.bf16.msra.mxu0 %v3903_v58  ;;  %1747 = vmatpush1.bf16.msra.mxu1 %v3906_v59  ;;  %v3999_v58 = vld [vmem:[#allocation7 + $0x68] ss:$16 sps:$4 sm:$0xff]   ;;  %v4004_v59 = vld [vmem:[#allocation7 + $0x84] ss:$16 sps:$4 sm:$0xff]  }
  0xfd   :  { %1584 = vmatprep.subr.bf16.mxu0 %v3911_v60  ;;  %1748 = vmatprep.subr.bf16.mxu1 %v3914_v61  ;;  %v4007_v60 = vld [vmem:[#allocation7 + $0x8c] ss:$16 sps:$4 sm:$0xff]   ;;  %v4002_v61 = vld [vmem:[#allocation7 + $0x80] ss:$16 sps:$4 sm:$0xff]  }
 0x100   :  { %1585 = vmatpush1.bf16.msra.mxu0 %v3909_v62  ;;  %1749 = vmatpush1.bf16.msra.mxu1 %v3912_v63  ;;  %v4005_v62 = vld [vmem:[#allocation7 + $0x88] ss:$16 sps:$4 sm:$0xff]   ;;  %v4010_v63 = vld [vmem:[#allocation7 + $0xa4] ss:$16 sps:$4 sm:$0xff]  }
 0x101   :  { %1586 = vmatprep.subr.bf16.mxu0 %v3917_v0  ;;  %1750 = vmatprep.subr.bf16.mxu1 %v3920_v1  ;;  %v4013_v0 = vld [vmem:[#allocation7 + $0xac] ss:$16 sps:$4 sm:$0xff]   ;;  %v4008_v1 = vld [vmem:[#allocation7 + $0xa0] ss:$16 sps:$4 sm:$0xff]  }
 0x104   :  { %1587 = vmatpush1.bf16.msra.mxu0 %v3915_v2  ;;  %1751 = vmatpush1.bf16.msra.mxu1 %v3918_v3  ;;  %v4011_v2 = vld [vmem:[#allocation7 + $0xa8] ss:$16 sps:$4 sm:$0xff]   ;;  %v4016_v3 = vld [vmem:[#allocation7 + $0xc4] ss:$16 sps:$4 sm:$0xff]  }
 0x105   :  { %1588 = vmatprep.subr.bf16.mxu0 %v3923_v4  ;;  %1752 = vmatprep.subr.bf16.mxu1 %v3926_v5  ;;  %v4019_v4 = vld [vmem:[#allocation7 + $0xcc] ss:$16 sps:$4 sm:$0xff]   ;;  %v4014_v5 = vld [vmem:[#allocation7 + $0xc0] ss:$16 sps:$4 sm:$0xff]  }
 0x108   :  { %1589 = vmatpush1.bf16.msra.mxu0 %v3921_v6  ;;  %1753 = vmatpush1.bf16.msra.mxu1 %v3924_v7  ;;  %v4017_v6 = vld [vmem:[#allocation7 + $0xc8] ss:$16 sps:$4 sm:$0xff]   ;;  %v4022_v7 = vld [vmem:[#allocation7 + $0xe4] ss:$16 sps:$4 sm:$0xff]  }
 0x109   :  { %1599 = vmatprep.subr.bf16.mxu0 %v3931_v8  ;;  %1763 = vmatprep.subr.bf16.mxu1 %v3934_v9  ;;  %v4025_v8 = vld [vmem:[#allocation7 + $0xec] ss:$16 sps:$4 sm:$0xff]   ;;  %v4020_v9 = vld [vmem:[#allocation7 + $0xe0] ss:$16 sps:$4 sm:$0xff]  }
 0x10b   :  { %1591 = vmatmul.mubr.bf16.vlgmr.msra.gmra.mrb[0].mxu0 %v3153_v13  ;;  %1755 = vmatmul.mubr.bf16.vlgmr.msra.gmra.mrb[0].mxu1 %v3153_v13  ;;  %v4031_v13 = vld [vmem:[#allocation7 + $0x10c] ss:$16 sps:$4 sm:$0xff]  }
 0x10c   :  { %1600 = vmatpush1.bf16.msra.mxu0 %v3929_v10  ;;  %1764 = vmatpush1.bf16.msra.mxu1 %v3932_v12  ;;  %v4023_v10 = vld [vmem:[#allocation7 + $0xe8] ss:$16 sps:$4 sm:$0xff]   ;;  %v4028_v12 = vld [vmem:[#allocation7 + $0x104] ss:$16 sps:$4 sm:$0xff]  }
 0x10d   :  { %1601 = vmatprep.subr.bf16.mxu0 %v3937_v14  ;;  %1765 = vmatprep.subr.bf16.mxu1 %v3940_v15  ;;  %v4026_v14 = vld [vmem:[#allocation7 + $0x100] ss:$16 sps:$4 sm:$0xff]   ;;  %v4029_v15 = vld [vmem:[#allocation7 + $0x108] ss:$16 sps:$4 sm:$0xff]  }
 0x10e   :  { %1631 = vmatprep.mubr.bf16.mxu0 %v4332_v22  ;;  %1795 = vmatprep.mubr.bf16.mxu1 %v4332_v22  ;;  %v4038_v22 = vld [vmem:[#allocation7 + $0x140] ss:$16 sps:$4 sm:$0xff]  }
 0x110   :  { %1602 = vmatpush1.bf16.msra.mxu0 %v3935_v16  ;;  %1766 = vmatpush1.bf16.msra.mxu1 %v3938_v17  ;;  %v4034_v16 = vld [vmem:[#allocation7 + $0x124] ss:$16 sps:$4 sm:$0xff]   ;;  %v4037_v17 = vld [vmem:[#allocation7 + $0x12c] ss:$16 sps:$4 sm:$0xff]  }
 0x111   :  { %1603 = vmatprep.subr.bf16.mxu0 %v3943_v18  ;;  %1767 = vmatprep.subr.bf16.mxu1 %v3946_v19  ;;  %v4032_v18 = vld [vmem:[#allocation7 + $0x120] ss:$16 sps:$4 sm:$0xff]   ;;  %v4035_v19 = vld [vmem:[#allocation7 + $0x128] ss:$16 sps:$4 sm:$0xff]  }
 0x114   :  { %1604 = vmatpush1.bf16.msra.mxu0 %v3941_v20  ;;  %1768 = vmatpush1.bf16.msra.mxu1 %v3944_v21  ;;  %v4040_v20 = vld [vmem:[#allocation7 + $0x144] ss:$16 sps:$4 sm:$0xff]   ;;  %v4043_v21 = vld [vmem:[#allocation7 + $0x14c] ss:$16 sps:$4 sm:$0xff]  }
 0x115   :  { %1605 = vmatprep.subr.bf16.mxu0 %v3949_v11  ;;  %1769 = vmatprep.subr.bf16.mxu1 %v3952_v23  ;;  %v4041_v11 = vld [vmem:[#allocation7 + $0x148] ss:$16 sps:$4 sm:$0xff]   ;;  %v4046_v23 = vld [vmem:[#allocation7 + $0x164] ss:$16 sps:$4 sm:$0xff]  }
 0x118   :  { %1606 = vmatpush1.bf16.msra.mxu0 %v3947_v24  ;;  %1770 = vmatpush1.bf16.msra.mxu1 %v3950_v25  ;;  %v4049_v24 = vld [vmem:[#allocation7 + $0x16c] ss:$16 sps:$4 sm:$0xff]   ;;  %v4044_v25 = vld [vmem:[#allocation7 + $0x160] ss:$16 sps:$4 sm:$0xff]  }
 0x119   :  { %1607 = vmatprep.subr.bf16.mxu0 %v3955_v26  ;;  %1771 = vmatprep.subr.bf16.mxu1 %v3958_v27  ;;  %v4047_v26 = vld [vmem:[#allocation7 + $0x168] ss:$16 sps:$4 sm:$0xff]   ;;  %v4052_v27 = vld [vmem:[#allocation7 + $0x184] ss:$16 sps:$4 sm:$0xff]  }
 0x11c   :  { %1608 = vmatpush1.bf16.msra.mxu0 %v3953_v28  ;;  %1772 = vmatpush1.bf16.msra.mxu1 %v3956_v29  ;;  %v4055_v28 = vld [vmem:[#allocation7 + $0x18c] ss:$16 sps:$4 sm:$0xff]   ;;  %v4050_v29 = vld [vmem:[#allocation7 + $0x180] ss:$16 sps:$4 sm:$0xff]  }
 0x11d   :  { %1609 = vmatprep.subr.bf16.mxu0 %v3961_v30  ;;  %1773 = vmatprep.subr.bf16.mxu1 %v3964_v31  ;;  %v4053_v30 = vld [vmem:[#allocation7 + $0x188] ss:$16 sps:$4 sm:$0xff]   ;;  %v4058_v31 = vld [vmem:[#allocation7 + $0x1a4] ss:$16 sps:$4 sm:$0xff]  }
 0x120   :  { %1610 = vmatpush1.bf16.msra.mxu0 %v3959_v32  ;;  %1774 = vmatpush1.bf16.msra.mxu1 %v3962_v33  ;;  %v4061_v32 = vld [vmem:[#allocation7 + $0x1ac] ss:$16 sps:$4 sm:$0xff]   ;;  %v4056_v33 = vld [vmem:[#allocation7 + $0x1a0] ss:$16 sps:$4 sm:$0xff]  }
 0x121   :  { %1611 = vmatprep.subr.bf16.mxu0 %v3967_v34  ;;  %1775 = vmatprep.subr.bf16.mxu1 %v3970_v35  ;;  %v4059_v34 = vld [vmem:[#allocation7 + $0x1a8] ss:$16 sps:$4 sm:$0xff]   ;;  %v4064_v35 = vld [vmem:[#allocation7 + $0x1c4] ss:$16 sps:$4 sm:$0xff]  }
 0x124   :  { %1612 = vmatpush1.bf16.msra.mxu0 %v3965_v36  ;;  %1776 = vmatpush1.bf16.msra.mxu1 %v3968_v37  ;;  %v4067_v36 = vld [vmem:[#allocation7 + $0x1cc] ss:$16 sps:$4 sm:$0xff]   ;;  %v4062_v37 = vld [vmem:[#allocation7 + $0x1c0] ss:$16 sps:$4 sm:$0xff]  }
 0x125   :  { %1613 = vmatprep.subr.bf16.mxu0 %v3973_v38  ;;  %1777 = vmatprep.subr.bf16.mxu1 %v3976_v39  ;;  %v4065_v38 = vld [vmem:[#allocation7 + $0x1c8] ss:$16 sps:$4 sm:$0xff]   ;;  %v4070_v39 = vld [vmem:[#allocation7 + $0x1e4] ss:$16 sps:$4 sm:$0xff]  }
 0x128   :  { %1614 = vmatpush1.bf16.msra.mxu0 %v3971_v40  ;;  %1778 = vmatpush1.bf16.msra.mxu1 %v3974_v41  ;;  %v4073_v40 = vld [vmem:[#allocation7 + $0x1ec] ss:$16 sps:$4 sm:$0xff]   ;;  %v4068_v41 = vld [vmem:[#allocation7 + $0x1e0] ss:$16 sps:$4 sm:$0xff]  }
 0x129   :  { %2602 = vmatprep.subr.bf16.mxu0 %v3980_v42  ;;  %2684 = vmatprep.subr.bf16.mxu1 %v3983_v43  ;;  %v4071_v42 = vld [vmem:[#allocation7 + $0x1e8] ss:$16 sps:$4 sm:$0xff]   ;;  %v4076_v43 = vld [vmem:[#allocation7 + $0x204] ss:$16 sps:$4 sm:$0xff]  }
 0x12b   :  { %1632 = vmatmul.mubr.bf16.vlgmr.msra.gmra.mrb[0].mxu0 %v3977_v44  ;;  %1796 = vmatmul.mubr.bf16.vlgmr.msra.gmra.mrb[0].mxu1 %v3977_v44  ;;  %v4079_v44 = vld [vmem:[#allocation7 + $0x20c] ss:$16 sps:$4 sm:$0xff]  }
 0x12c   :  { %2603 = vmatpush1.bf16.msra.mxu0 %v3978_v45  ;;  %2685 = vmatpush1.bf16.msra.mxu1 %v3981_v46  ;;  %v311_v45 = vlaneseq }
 0x12d   :  { %2604 = vmatprep.subr.bf16.mxu0 %v3986_v47  ;;  %2686 = vmatprep.subr.bf16.mxu1 %v3989_v48  ;;  %v4447_v48 = vld [vmem:[%s4496_s2] sm:$0xf] }
 0x12e   :  { %v4441_v46 = vshrl.u32 %v311_v45, 7 }
 0x130   :  { %2605 = vmatpush1.bf16.msra.mxu0 %v3984_v49  ;;  %2687 = vmatpush1.bf16.msra.mxu1 %v3987_v50  ;;  %v313_v47 = vsub.s32 0, %v4441_v46  ;;  %v317_v49 = vsub.s32 1, %v4441_v46  ;;  %v325_v50 = vsub.s32 3, %v4441_v46 }
 0x131   :  { %2606 = vmatprep.subr.bf16.mxu0 %v3992_v51  ;;  %2688 = vmatprep.subr.bf16.mxu1 %v3995_v52 }
 0x132   :  { %v314_v51 = vrot.slane %v4447_v48, %v313_v47  ;;  %v318_v52 = vrot.slane %v4447_v48, %v317_v49 }
 0x134   :  { %2607 = vmatpush1.bf16.msra.mxu0 %v3990_v53  ;;  %2689 = vmatpush1.bf16.msra.mxu1 %v3993_v54  ;;  %v326_v53 = vrot.slane %v4447_v48, %v325_v50 }
 0x135   :  { %2608 = vmatprep.subr.bf16.mxu0 %v3998_v55  ;;  %2690 = vmatprep.subr.bf16.mxu1 %v4001_v56 }
 0x138   :  { %2609 = vmatpush1.bf16.msra.mxu0 %v3996_v57  ;;  %2691 = vmatpush1.bf16.msra.mxu1 %v3999_v58 }
 0x139   :  { %2610 = vmatprep.subr.bf16.mxu0 %v4004_v59  ;;  %2692 = vmatprep.subr.bf16.mxu1 %v4007_v60 }
 0x13c   :  { %2611 = vmatpush1.bf16.msra.mxu0 %v4002_v61  ;;  %2693 = vmatpush1.bf16.msra.mxu1 %v4005_v62 }
 0x13d   :  { %2612 = vmatprep.subr.bf16.mxu0 %v4010_v63  ;;  %2694 = vmatprep.subr.bf16.mxu1 %v4013_v0 }
 0x140   :  { %2613 = vmatpush1.bf16.msra.mxu0 %v4008_v1  ;;  %2695 = vmatpush1.bf16.msra.mxu1 %v4011_v2 }
 0x141   :  { %2614 = vmatprep.subr.bf16.mxu0 %v4016_v3  ;;  %2696 = vmatprep.subr.bf16.mxu1 %v4019_v4 }
 0x144   :  { %2615 = vmatpush1.bf16.msra.mxu0 %v4014_v5  ;;  %2697 = vmatpush1.bf16.msra.mxu1 %v4017_v6  ;;  %v4074_v5 = vld [vmem:[#allocation7 + $0x200] ss:$16 sps:$4 sm:$0xff]   ;;  %v4077_v6 = vld [vmem:[#allocation7 + $0x208] ss:$16 sps:$4 sm:$0xff]  }
 0x145   :  { %2616 = vmatprep.subr.bf16.mxu0 %v4022_v7  ;;  %2698 = vmatprep.subr.bf16.mxu1 %v4025_v8  ;;  %v4082_v8 = vld [vmem:[#allocation7 + $0x224] ss:$16 sps:$4 sm:$0xff]  }
 0x148   :  { %2617 = vmatpush1.bf16.msra.mxu0 %v4020_v9  ;;  %2699 = vmatpush1.bf16.msra.mxu1 %v4023_v10  ;;  %v4085_v9 = vld [vmem:[#allocation7 + $0x22c] ss:$16 sps:$4 sm:$0xff]  }
 0x149   :  { %2618 = vmatprep.subr.bf16.mxu0 %v4028_v12  ;;  %2700 = vmatprep.subr.bf16.mxu1 %v4031_v13  ;;  %v4080_v12 = vld [vmem:[#allocation7 + $0x220] ss:$16 sps:$4 sm:$0xff]   ;;  %v4083_v13 = vld [vmem:[#allocation7 + $0x228] ss:$16 sps:$4 sm:$0xff]  }
 0x14c   :  { %2619 = vmatpush1.bf16.msra.mxu0 %v4026_v14  ;;  %2701 = vmatpush1.bf16.msra.mxu1 %v4029_v15  ;;  %v4088_v14 = vld [vmem:[#allocation7 + $0x244] ss:$16 sps:$4 sm:$0xff]   ;;  %v4091_v15 = vld [vmem:[#allocation7 + $0x24c] ss:$16 sps:$4 sm:$0xff]  }
 0x14d   :  { %2620 = vmatprep.subr.bf16.mxu0 %v4034_v16  ;;  %2702 = vmatprep.subr.bf16.mxu1 %v4037_v17  ;;  %v4086_v16 = vld [vmem:[#allocation7 + $0x240] ss:$16 sps:$4 sm:$0xff]   ;;  %v4089_v17 = vld [vmem:[#allocation7 + $0x248] ss:$16 sps:$4 sm:$0xff]  }
 0x150   :  { %2621 = vmatpush1.bf16.msra.mxu0 %v4032_v18  ;;  %2703 = vmatpush1.bf16.msra.mxu1 %v4035_v19  ;;  %v4094_v18 = vld [vmem:[#allocation7 + $0x264] ss:$16 sps:$4 sm:$0xff]   ;;  %v4097_v19 = vld [vmem:[#allocation7 + $0x26c] ss:$16 sps:$4 sm:$0xff]  }
 0x151   :  { %2622 = vmatprep.subr.bf16.mxu0 %v4040_v20  ;;  %2704 = vmatprep.subr.bf16.mxu1 %v4043_v21  ;;  %v4092_v20 = vld [vmem:[#allocation7 + $0x260] ss:$16 sps:$4 sm:$0xff]   ;;  %v4095_v21 = vld [vmem:[#allocation7 + $0x268] ss:$16 sps:$4 sm:$0xff]  }
 0x154   :  { %2623 = vmatpush1.bf16.msra.mxu0 %v4038_v22  ;;  %2705 = vmatpush1.bf16.msra.mxu1 %v4041_v11  ;;  %v4100_v22 = vld [vmem:[#allocation7 + $0x284] ss:$16 sps:$4 sm:$0xff]   ;;  %v4103_v11 = vld [vmem:[#allocation7 + $0x28c] ss:$16 sps:$4 sm:$0xff]  }
 0x155   :  { %2624 = vmatprep.subr.bf16.mxu0 %v4046_v23  ;;  %2706 = vmatprep.subr.bf16.mxu1 %v4049_v24  ;;  %v4098_v23 = vld [vmem:[#allocation7 + $0x280] ss:$16 sps:$4 sm:$0xff]   ;;  %v4101_v24 = vld [vmem:[#allocation7 + $0x288] ss:$16 sps:$4 sm:$0xff]  }
 0x158   :  { %2625 = vmatpush1.bf16.msra.mxu0 %v4044_v25  ;;  %2707 = vmatpush1.bf16.msra.mxu1 %v4047_v26  ;;  %v4106_v25 = vld [vmem:[#allocation7 + $0x2a4] ss:$16 sps:$4 sm:$0xff]   ;;  %v4109_v26 = vld [vmem:[#allocation7 + $0x2ac] ss:$16 sps:$4 sm:$0xff]  }
 0x159   :  { %2626 = vmatprep.subr.bf16.mxu0 %v4052_v27  ;;  %2708 = vmatprep.subr.bf16.mxu1 %v4055_v28  ;;  %v4104_v27 = vld [vmem:[#allocation7 + $0x2a0] ss:$16 sps:$4 sm:$0xff]   ;;  %v4107_v28 = vld [vmem:[#allocation7 + $0x2a8] ss:$16 sps:$4 sm:$0xff]  }
 0x15c   :  { %2627 = vmatpush1.bf16.msra.mxu0 %v4050_v29  ;;  %2709 = vmatpush1.bf16.msra.mxu1 %v4053_v30  ;;  %v4112_v29 = vld [vmem:[#allocation7 + $0x2c4] ss:$16 sps:$4 sm:$0xff]   ;;  %v4115_v30 = vld [vmem:[#allocation7 + $0x2cc] ss:$16 sps:$4 sm:$0xff]  }
 0x15d   :  { %2628 = vmatprep.subr.bf16.mxu0 %v4058_v31  ;;  %2710 = vmatprep.subr.bf16.mxu1 %v4061_v32  ;;  %v4110_v31 = vld [vmem:[#allocation7 + $0x2c0] ss:$16 sps:$4 sm:$0xff]   ;;  %v4113_v32 = vld [vmem:[#allocation7 + $0x2c8] ss:$16 sps:$4 sm:$0xff]  }
 0x160   :  { %2629 = vmatpush1.bf16.msra.mxu0 %v4056_v33  ;;  %2711 = vmatpush1.bf16.msra.mxu1 %v4059_v34  ;;  %v4118_v33 = vld [vmem:[#allocation7 + $0x2e4] ss:$16 sps:$4 sm:$0xff]   ;;  %v4121_v34 = vld [vmem:[#allocation7 + $0x2ec] ss:$16 sps:$4 sm:$0xff]  }
 0x161   :  { %2630 = vmatprep.subr.bf16.mxu0 %v4064_v35  ;;  %2712 = vmatprep.subr.bf16.mxu1 %v4067_v36  ;;  %v4116_v35 = vld [vmem:[#allocation7 + $0x2e0] ss:$16 sps:$4 sm:$0xff]   ;;  %v4119_v36 = vld [vmem:[#allocation7 + $0x2e8] ss:$16 sps:$4 sm:$0xff]  }
 0x164   :  { %2631 = vmatpush1.bf16.msra.mxu0 %v4062_v37  ;;  %2713 = vmatpush1.bf16.msra.mxu1 %v4065_v38  ;;  %v4124_v37 = vld [vmem:[#allocation7 + $0x304] ss:$16 sps:$4 sm:$0xff]   ;;  %v4127_v38 = vld [vmem:[#allocation7 + $0x30c] ss:$16 sps:$4 sm:$0xff]  }
 0x165   :  { %2632 = vmatprep.subr.bf16.mxu0 %v4070_v39  ;;  %2714 = vmatprep.subr.bf16.mxu1 %v4073_v40  ;;  %v4122_v39 = vld [vmem:[#allocation7 + $0x300] ss:$16 sps:$4 sm:$0xff]   ;;  %v4125_v40 = vld [vmem:[#allocation7 + $0x308] ss:$16 sps:$4 sm:$0xff]  }
 0x168   :  { %2633 = vmatpush1.bf16.msra.mxu0 %v4068_v41  ;;  %2715 = vmatpush1.bf16.msra.mxu1 %v4071_v42  ;;  %v4130_v41 = vld [vmem:[#allocation7 + $0x324] ss:$16 sps:$4 sm:$0xff]   ;;  %v4133_v42 = vld [vmem:[#allocation7 + $0x32c] ss:$16 sps:$4 sm:$0xff]  }
 0x169   :  { %2643 = vmatprep.subr.bf16.mxu0 %v4076_v43  ;;  %2725 = vmatprep.subr.bf16.mxu1 %v4079_v44  ;;  %v4128_v43 = vld [vmem:[#allocation7 + $0x320] ss:$16 sps:$4 sm:$0xff]   ;;  %v4131_v44 = vld [vmem:[#allocation7 + $0x328] ss:$16 sps:$4 sm:$0xff]  }
 0x1fe   :  { %v1633_v54 = vpop.f32.mrb[0].mxu0  ;;  %v4460_v55 = vpop.f32.mrb[0].mxu1 }
 0x1ff   :  { %v3585_v56 = vadd.f32 %v1633_v54, %v314_v51  ;;  %v1635_v57 = vpop.f32.mrb[1].mxu0  ;;  %v1799_v58 = vpop.f32.mrb[1].mxu1  ;;  %v4136_v51 = vld [vmem:[#allocation7 + $0x344] ss:$16 sps:$4 sm:$0xff]   ;;  %v4137_v54 = vld [vmem:[#allocation7 + $0x348] ss:$16 sps:$4 sm:$0xff]  }
 0x200   :  { %v3586_v59 = vadd.f32 %v1635_v57, %v318_v52  ;;  %v3588_v60 = vadd.f32 %v1799_v58, %v326_v53  ;;  %v1637_v61 = vpop.f32.mrb[2].mxu0  ;;  %v1801_v62 = vpop.f32.mrb[2].mxu1  ;;  %v4139_v52 = vld [vmem:[#allocation7 + $0x34c] ss:$16 sps:$4 sm:$0xff]   ;;  %v4134_v53 = vld [vmem:[#allocation7 + $0x340] ss:$16 sps:$4 sm:$0xff]  }
 0x201   :  { %v1804_v63 = vmax.f32 %v3585_v56, 0.0  ;;  %v1638_v0 = vpop.f32.mrb[3].mxu0  ;;  %v1802_v1 = vpop.f32.mrb[3].mxu1  ;;  %v4142_v56 = vld [vmem:[#allocation7 + $0x364] ss:$16 sps:$4 sm:$0xff]  }
 0x202   :  { %v1805_v2 = vmax.f32 %v3586_v59, 0.0  ;;  %v1807_v3 = vmax.f32 %v3588_v60, 0.0  ;;  %v4145_v57 = vld [vmem:[#allocation7 + $0x36c] ss:$16 sps:$4 sm:$0xff]   ;;  %v4140_v58 = vld [vmem:[#allocation7 + $0x360] ss:$16 sps:$4 sm:$0xff]  }
 0x203   :  { %v1808_v7 = vpack.c.bf16 %v1804_v63, %v1804_v63  ;;  %v4143_v59 = vld [vmem:[#allocation7 + $0x368] ss:$16 sps:$4 sm:$0xff]   ;;  %v4148_v60 = vld [vmem:[#allocation7 + $0x384] ss:$16 sps:$4 sm:$0xff]   ;;  %v4151_v61 = vld [vmem:[#allocation7 + $0x38c] ss:$16 sps:$4 sm:$0xff]  }
 0x204   :  { %v1809_v4 = vpack.c.bf16 %v1805_v2, %v1805_v2  ;;  %v1811_v10 = vpack.c.bf16 %v1807_v3, %v1807_v3  ;;  %v4146_v62 = vld [vmem:[#allocation7 + $0x380] ss:$16 sps:$4 sm:$0xff]   ;;  %v4149_v63 = vld [vmem:[#allocation7 + $0x388] ss:$16 sps:$4 sm:$0xff]   ;;  %v321_v0 = vsub.s32 2, %v4441_v46 }
 0x205   :  { %v4154_v1 = vld [vmem:[#allocation7 + $0x3a4] ss:$16 sps:$4 sm:$0xff]   ;;  %v4157_v2 = vld [vmem:[#allocation7 + $0x3ac] ss:$16 sps:$4 sm:$0xff]   ;;  %v4152_v3 = vld [vmem:[#allocation7 + $0x3a0] ss:$16 sps:$4 sm:$0xff]  }
 0x206   :  { %2634 = vmatprep.mubr.bf16.mxu0 %v1809_v4  ;;  %2716 = vmatprep.mubr.bf16.mxu1 %v1809_v4  ;;  %v4155_v4 = vld [vmem:[#allocation7 + $0x3a8] ss:$16 sps:$4 sm:$0xff]  }
 0x207   :  { %2635 = vmatmul.mubr.bf16.vlgmr.msra.gmra.mrb[4].mxu0 %v1808_v7  ;;  %2717 = vmatmul.mubr.bf16.vlgmr.msra.gmra.mrb[4].mxu1 %v1808_v7  ;;  %v4163_v7 = vld [vmem:[#allocation7 + $0x3cc] ss:$16 sps:$4 sm:$0xff]  }
 0x208   :  { %2644 = vmatpush1.bf16.msra.mxu0 %v4074_v5  ;;  %2726 = vmatpush1.bf16.msra.mxu1 %v4077_v6  ;;  %v322_v5 = vrot.slane %v4447_v48, %v321_v0  ;;  %v4160_v6 = vld [vmem:[#allocation7 + $0x3c4] ss:$16 sps:$4 sm:$0xff]  }
 0x209   :  { %2675 = vmatprep.mubr.bf16.mxu0 %v1811_v10  ;;  %2757 = vmatprep.mubr.bf16.mxu1 %v1811_v10  ;;  %v4170_v48 = vld [vmem:[#allocation8 + $0x40] sm:$0xff]  }
 0x20a   :  { %2645 = vmatprep.subr.bf16.mxu0 %v4082_v8  ;;  %2727 = vmatprep.subr.bf16.mxu1 %v4085_v9  ;;  %v4158_v8 = vld [vmem:[#allocation7 + $0x3c0] ss:$16 sps:$4 sm:$0xff]   ;;  %v4161_v9 = vld [vmem:[#allocation7 + $0x3c8] ss:$16 sps:$4 sm:$0xff]   ;;  %v3587_v10 = vadd.f32 %v4460_v55, %v322_v5 }
 0x20b   :  { %v4174_v55 = vld [vmem:[#allocation8 + $0x48] sm:$0xff]  }
 0x20c   :  { %2646 = vmatpush1.bf16.msra.mxu0 %v4080_v12  ;;  %2728 = vmatpush1.bf16.msra.mxu1 %v4083_v13  ;;  %v4166_v12 = vld [vmem:[#allocation7 + $0x3e4] ss:$16 sps:$4 sm:$0xff]   ;;  %v4169_v13 = vld [vmem:[#allocation7 + $0x3ec] ss:$16 sps:$4 sm:$0xff]  }
 0x20d   :  { %2647 = vmatprep.subr.bf16.mxu0 %v4088_v14  ;;  %2729 = vmatprep.subr.bf16.mxu1 %v4091_v15  ;;  %v4164_v14 = vld [vmem:[#allocation7 + $0x3e0] ss:$16 sps:$4 sm:$0xff]   ;;  %v4167_v15 = vld [vmem:[#allocation7 + $0x3e8] ss:$16 sps:$4 sm:$0xff]  }
 0x210   :  { %2648 = vmatpush1.bf16.msra.mxu0 %v4086_v16  ;;  %2730 = vmatpush1.bf16.msra.mxu1 %v4089_v17  ;;  %v1806_v16 = vmax.f32 %v3587_v10, 0.0  ;;  %v4171_v17 = vld [vmem:[#allocation8 + $0xc0] sm:$0xff]  }
 0x211   :  { %2649 = vmatprep.subr.bf16.mxu0 %v4094_v18  ;;  %2731 = vmatprep.subr.bf16.mxu1 %v4097_v19  ;;  %v4172_v18 = vld [vmem:[#allocation8] sm:$0xff]  }
 0x212   :  { %v4173_v19 = vld [vmem:[#allocation8 + $0x80] sm:$0xff]  }
 0x214   :  { %2650 = vmatpush1.bf16.msra.mxu0 %v4092_v20  ;;  %2732 = vmatpush1.bf16.msra.mxu1 %v4095_v21  ;;  %v1810_v20 = vpack.c.bf16 %v1806_v16, %v1806_v16  ;;  %v4175_v21 = vld [vmem:[#allocation8 + $0xc8] sm:$0xff]  }
 0x215   :  { %2651 = vmatprep.subr.bf16.mxu0 %v4100_v22  ;;  %2733 = vmatprep.subr.bf16.mxu1 %v4103_v11  ;;  %v4176_v22 = vld [vmem:[#allocation8 + $0x8] sm:$0xff]  }
 0x216   :  { %v4177_v11 = vld [vmem:[#allocation8 + $0x88] sm:$0xff]  }
 0x218   :  { %2652 = vmatpush1.bf16.msra.mxu0 %v4098_v23  ;;  %2734 = vmatpush1.bf16.msra.mxu1 %v4101_v24  ;;  %v4178_v23 = vld [vmem:[#allocation8 + $0x50] sm:$0xff]  }
 0x219   :  { %2653 = vmatprep.subr.bf16.mxu0 %v4106_v25  ;;  %2735 = vmatprep.subr.bf16.mxu1 %v4109_v26  ;;  %v4179_v24 = vld [vmem:[#allocation8 + $0xd0] sm:$0xff]  }
 0x21a   :  { %v4180_v25 = vld [vmem:[#allocation8 + $0x10] sm:$0xff]  }
 0x21b   :  { %v4181_v26 = vld [vmem:[#allocation8 + $0x90] sm:$0xff]  }
 0x21c   :  { %2654 = vmatpush1.bf16.msra.mxu0 %v4104_v27  ;;  %2736 = vmatpush1.bf16.msra.mxu1 %v4107_v28  ;;  %v4182_v27 = vld [vmem:[#allocation8 + $0x58] sm:$0xff]  }
 0x21d   :  { %2655 = vmatprep.subr.bf16.mxu0 %v4112_v29  ;;  %2737 = vmatprep.subr.bf16.mxu1 %v4115_v30  ;;  %v4183_v28 = vld [vmem:[#allocation8 + $0xd8] sm:$0xff]  }
 0x21e   :  { %v4184_v29 = vld [vmem:[#allocation8 + $0x18] sm:$0xff]  }
 0x21f   :  { %v4185_v30 = vld [vmem:[#allocation8 + $0x98] sm:$0xff]  }
 0x220   :  { %2656 = vmatpush1.bf16.msra.mxu0 %v4110_v31  ;;  %2738 = vmatpush1.bf16.msra.mxu1 %v4113_v32  ;;  %v4186_v31 = vld [vmem:[#allocation8 + $0x60] sm:$0xff]  }
 0x221   :  { %2657 = vmatprep.subr.bf16.mxu0 %v4118_v33  ;;  %2739 = vmatprep.subr.bf16.mxu1 %v4121_v34  ;;  %v4187_v32 = vld [vmem:[#allocation8 + $0xe0] sm:$0xff]  }
 0x222   :  { %v4188_v33 = vld [vmem:[#allocation8 + $0x20] sm:$0xff]  }
 0x223   :  { %v4189_v34 = vld [vmem:[#allocation8 + $0xa0] sm:$0xff]  }
 0x224   :  { %2658 = vmatpush1.bf16.msra.mxu0 %v4116_v35  ;;  %2740 = vmatpush1.bf16.msra.mxu1 %v4119_v36  ;;  %v4190_v35 = vld [vmem:[#allocation8 + $0x68] sm:$0xff]  }
 0x225   :  { %2659 = vmatprep.subr.bf16.mxu0 %v4124_v37  ;;  %2741 = vmatprep.subr.bf16.mxu1 %v4127_v38  ;;  %v4191_v36 = vld [vmem:[#allocation8 + $0xe8] sm:$0xff]  }
 0x226   :  { %v4192_v37 = vld [vmem:[#allocation8 + $0x28] sm:$0xff]  }
 0x227   :  { %v4193_v38 = vld [vmem:[#allocation8 + $0xa8] sm:$0xff]  }
 0x228   :  { %2660 = vmatpush1.bf16.msra.mxu0 %v4122_v39  ;;  %2742 = vmatpush1.bf16.msra.mxu1 %v4125_v40  ;;  %v4194_v39 = vld [vmem:[#allocation8 + $0x70] sm:$0xff]  }
 0x229   :  { %2661 = vmatprep.subr.bf16.mxu0 %v4130_v41  ;;  %2743 = vmatprep.subr.bf16.mxu1 %v4133_v42  ;;  %v4195_v40 = vld [vmem:[#allocation8 + $0xf0] sm:$0xff]  }
 0x22a   :  { %v4196_v41 = vld [vmem:[#allocation8 + $0x30] sm:$0xff]  }
 0x22b   :  { %v4197_v42 = vld [vmem:[#allocation8 + $0xb0] sm:$0xff]  }
 0x22c   :  { %2662 = vmatpush1.bf16.msra.mxu0 %v4128_v43  ;;  %2744 = vmatpush1.bf16.msra.mxu1 %v4131_v44  ;;  %v4198_v43 = vld [vmem:[#allocation8 + $0x78] sm:$0xff]  }
 0x22d   :  { %2663 = vmatprep.subr.bf16.mxu0 %v4136_v51  ;;  %2745 = vmatprep.subr.bf16.mxu1 %v4139_v52  ;;  %v4199_v44 = vld [vmem:[#allocation8 + $0xf8] sm:$0xff]  }
 0x22e   :  { %v4200_v51 = vld [vmem:[#allocation8 + $0x38] sm:$0xff]  }
 0x22f   :  { %v4201_v52 = vld [vmem:[#allocation8 + $0xb8] sm:$0xff]  }
 0x230   :  { %2664 = vmatpush1.bf16.msra.mxu0 %v4134_v53  ;;  %2746 = vmatpush1.bf16.msra.mxu1 %v4137_v54  ;;  %v1940_v53 = vld [vmem:[%s4498_s4] sm:$0xf] }
 0x231   :  { %2665 = vmatprep.subr.bf16.mxu0 %v4142_v56  ;;  %2747 = vmatprep.subr.bf16.mxu1 %v4145_v57  ;;  %v1945_v54 = vrot.slane %v1940_v53, %v313_v47  ;;  %v1953_v56 = vrot.slane %v1940_v53, %v321_v0  ;;  %v1949_v57 = vrot.slane %v1940_v53, %v317_v49 }
 0x234   :  { %2666 = vmatpush1.bf16.msra.mxu0 %v4140_v58  ;;  %2748 = vmatpush1.bf16.msra.mxu1 %v4143_v59  ;;  %v1957_v58 = vrot.slane %v1940_v53, %v325_v50 }
 0x235   :  { %2667 = vmatprep.subr.bf16.mxu0 %v4148_v60  ;;  %2749 = vmatprep.subr.bf16.mxu1 %v4151_v61 }
 0x238   :  { %2668 = vmatpush1.bf16.msra.mxu0 %v4146_v62  ;;  %2750 = vmatpush1.bf16.msra.mxu1 %v4149_v63 }
 0x239   :  { %2669 = vmatprep.subr.bf16.mxu0 %v4154_v1  ;;  %2751 = vmatprep.subr.bf16.mxu1 %v4157_v2 }
 0x23c   :  { %2670 = vmatpush1.bf16.msra.mxu0 %v4152_v3  ;;  %2752 = vmatpush1.bf16.msra.mxu1 %v4155_v4 }
 0x23d   :  { %2671 = vmatprep.subr.bf16.mxu0 %v4160_v6  ;;  %2753 = vmatprep.subr.bf16.mxu1 %v4163_v7 }
 0x240   :  { %2672 = vmatpush1.bf16.msra.mxu0 %v4158_v8  ;;  %2754 = vmatpush1.bf16.msra.mxu1 %v4161_v9 }
 0x241   :  { %2673 = vmatprep.subr.bf16.mxu0 %v4166_v12  ;;  %2755 = vmatprep.subr.bf16.mxu1 %v4169_v13 }
 0x244   :  { %2674 = vmatpush1.bf16.msra.mxu0 %v4164_v14  ;;  %2756 = vmatpush1.bf16.msra.mxu1 %v4167_v15  ;;  %v3508_v14 = vld [vmem:[%s4500_s6] ss:$0 sm:$0xff]  ;;  %s4333_s6 = smov [#allocation10]  }
 0x245   :  { %3541 = vmatprep.subr.bf16.mxu0 %v4170_v48  ;;  %3563 = vmatprep.subr.bf16.mxu1 %v4171_v17  ;;  %v3118_v48 = vand.u32 127, %v311_v45  ;;  %s3138_s29 = sshll.u32 %s4333_s6, 4  ;;  %s3139_s29 = int_to_ptr.vmem [resolvable:$true] %s3138_s29 }
 0x246   :  { %s4294_s30 = scalar_lea.vmem %s3139_s29, 128  ;;  %p4299_p5 = scmp.lt.s32.totalorder %s3139_s29, %s3139_s29 }
 0x247   :  { %2676 = vmatmul.mubr.bf16.vlgmr.msra.gmra.mrb[4].mxu0 %v1810_v20  ;;  %2758 = vmatmul.mubr.bf16.vlgmr.msra.gmra.mrb[4].mxu1 %v1810_v20  ;;  %vm3119_vm0 = vcmp.lt.s32.totalorder %v3118_v48, 10  ;;  %p4295_p4 = scmp.ne.s32.totalorder %s3139_s29, %s4294_s30  ;;  %p4300_p6 = scmp.lt.s32.totalorder %s4294_s30, %s4294_s30 }
 0x248   :  { %3542 = vmatpush3.bf16.msra.mxu0 %v4172_v18  ;;  %3564 = vmatpush3.bf16.msra.mxu1 %v4173_v19 }
 0x249   :  { %3543 = vmatprep.subr.bf16.mxu0 %v4174_v55  ;;  %3565 = vmatprep.subr.bf16.mxu1 %v4175_v21  ;;  %p4301_p7 = por %p4300_p6, %p4299_p5 }
 0x24b   :  { %p4302_p8 = pnand %p4301_p7, %p4295_p4 }
 0x24c   :  { %3544 = vmatpush3.bf16.msra.mxu0 %v4176_v22  ;;  %3566 = vmatpush3.bf16.msra.mxu1 %v4177_v11 }
 0x24d   :  { %3545 = vmatprep.subr.bf16.mxu0 %v4178_v23  ;;  %3567 = vmatprep.subr.bf16.mxu1 %v4179_v24 }
 0x250   :  { %3546 = vmatpush3.bf16.msra.mxu0 %v4180_v25  ;;  %3568 = vmatpush3.bf16.msra.mxu1 %v4181_v26 }
 0x251   :  { %3547 = vmatprep.subr.bf16.mxu0 %v4182_v27  ;;  %3569 = vmatprep.subr.bf16.mxu1 %v4183_v28 }
 0x254   :  { %3548 = vmatpush3.bf16.msra.mxu0 %v4184_v29  ;;  %3570 = vmatpush3.bf16.msra.mxu1 %v4185_v30 }
 0x255   :  { %3549 = vmatprep.subr.bf16.mxu0 %v4186_v31  ;;  %3571 = vmatprep.subr.bf16.mxu1 %v4187_v32 }
 0x258   :  { %3550 = vmatpush3.bf16.msra.mxu0 %v4188_v33  ;;  %3572 = vmatpush3.bf16.msra.mxu1 %v4189_v34 }
 0x259   :  { %3551 = vmatprep.subr.bf16.mxu0 %v4190_v35  ;;  %3573 = vmatprep.subr.bf16.mxu1 %v4191_v36 }
 0x25c   :  { %3552 = vmatpush3.bf16.msra.mxu0 %v4192_v37  ;;  %3574 = vmatpush3.bf16.msra.mxu1 %v4193_v38 }
 0x25d   :  { %3553 = vmatprep.subr.bf16.mxu0 %v4194_v39  ;;  %3575 = vmatprep.subr.bf16.mxu1 %v4195_v40 }
 0x260   :  { %3554 = vmatpush3.bf16.msra.mxu0 %v4196_v41  ;;  %3576 = vmatpush3.bf16.msra.mxu1 %v4197_v42 }
 0x261   :  { %3555 = vmatprep.subr.bf16.mxu0 %v4198_v43  ;;  %3577 = vmatprep.subr.bf16.mxu1 %v4199_v44 }
 0x264   :  { %3556 = vmatpush3.bf16.msra.mxu0 %v4200_v51  ;;  %3578 = vmatpush3.bf16.msra.mxu1 %v4201_v52 }
 0x31a   :  { %v2677_v59 = vpop.f32.mrb[4].mxu0  ;;  %v2759_v60 = vpop.f32.mrb[4].mxu1 }
 0x31b   :  { %v3589_v61 = vadd.f32 %v2677_v59, %v1945_v54  ;;  %v3591_v62 = vadd.f32 %v2759_v60, %v1953_v56  ;;  %v2679_v63 = vpop.f32.mrb[5].mxu0  ;;  %v2761_v1 = vpop.f32.mrb[5].mxu1 }
 0x31c   :  { %v3590_v2 = vadd.f32 %v2679_v63, %v1949_v57  ;;  %v3592_v3 = vadd.f32 %v2761_v1, %v1957_v58  ;;  %v2681_v4 = vpop.f32.mrb[6].mxu0  ;;  %v2763_v5 = vpop.f32.mrb[6].mxu1 }
 0x31d   :  { %v2766_v47 = vmax.f32 %v3589_v61, 0.0  ;;  %v2768_v6 = vmax.f32 %v3591_v62, 0.0  ;;  %v2682_v7 = vpop.f32.mrb[7].mxu0  ;;  %v2764_v0 = vpop.f32.mrb[7].mxu1 }
 0x31e   :  { %v2767_v8 = vmax.f32 %v3590_v2, 0.0  ;;  %v2769_v9 = vmax.f32 %v3592_v3, 0.0 }
 0x31f   :  { %v2770_v46 = vpack.c.bf16 %v2766_v47, %v2766_v47  ;;  %v2772_v50 = vpack.c.bf16 %v2768_v6, %v2768_v6 }
 0x320   :  { %v2771_v49 = vpack.c.bf16 %v2767_v8, %v2767_v8  ;;  %v2773_v10 = vpack.c.bf16 %v2769_v9, %v2769_v9 }
 0x322   :  { %3069 = vmatprep.mubr.bf16.mxu0 %v2771_v49  ;;  %3109 = vmatprep.mubr.bf16.mxu1 %v2773_v10 }
 0x323   :  { %3070 = vmatmul.mubr.bf16.vlgmr.msra.gmra.mrb[8].mxu0 %v2770_v46  ;;  %3110 = vmatmul.mubr.bf16.vlgmr.msra.gmra.mrb[8].mxu1 %v2772_v50 }
 0x3f6   :  { %v3557_v12 = vpop.f32.mrb[8].mxu0  ;;  %v3579_v13 = vpop.f32.mrb[8].mxu1 }
 0x3f7   :  { %v3558_v15 = vpop.f32.mrb[9].mxu0  ;;  %v3580_v16 = vpop.f32.mrb[9].mxu1 }
 0x3f8   :  { %v3559_v17 = vadd.f32 %v3558_v15, %v3557_v12  ;;  %v3581_v18 = vadd.f32 %v3580_v16, %v3579_v13  ;;  %v3560_v19 = vpop.f32.mrb[10].mxu0  ;;  %v3582_v20 = vpop.f32.mrb[10].mxu1 }
 0x3f9   :  { %v3561_v55 = vpop.f32.mrb[11].mxu0  ;;  %v3583_v21 = vpop.f32.mrb[11].mxu1 }
 0x3fa   :  { %v3072_v22 = vadd.f32 %v3559_v17, %v3508_v14 }
 0x3fc   :  { %v3112_v11 = vadd.f32 %v3581_v18, %v3072_v22 }
 0x3fe   :  { %v3120_v23 = vsel %vm3119_vm0, %v3112_v11, -inf }
 0x3ff   :  { %3121 = vmax.xlane.f32.xlu0 %v3120_v23 }
 0x48c   :  { %v3122_v24 = vpop.xlane.xlu0 %3121 }
 0x48d   :  { %v3123_v25 = vsub.f32 %v3120_v23, %v3122_v24 }
 0x48f   :  { %v3124_v26 = vmul.f32 1.442695, %v3123_v25 }
 0x491   :  { %4202 = vpow2.f32 %v3124_v26 }
 0x49b   :  { %v4203_v27 = vpop.eup %4202 }
 0x49c   :  { %3126 = vadd.xlane.f32.xlu0 %v4203_v27 }
 0x529   :  { %v3127_v28 = vpop.xlane.xlu0 %3126 }
 0x52a   :  { %4204 = vlog2.f32 %v3127_v28 }
 0x534   :  { %v4205_v45 = vpop.eup %4204 }
 0x535   :  { %v3129_v29 = vmul.f32 0.6931472, %v4205_v45 }
 0x537   :  { %v3130_v30 = vsub.f32 %v3123_v25, %v3129_v29 }
 0x539   :  { %3131 = vst [vmem:[#allocation10] sm:$0xff] %v3130_v30 }
 0x53a   :  { %4305 = shalt.err (!%p4302_p8)
}
 0x53b   :  { %s4306_s10 = scalar_lea.hbm %s4501_s7, 128 }
 0x53c   :  { %p4307_p9 = scmp.ne.s32.totalorder %s4501_s7, %s4306_s10  ;;  %p4310_p10 = scmp.lt.u32.totalorder %s4306_s10, %s4501_s7 }
 0x53e   :  { %p4312_p11 = pnand %p4310_p10, %p4307_p9 }
 0x540   :  { %4315 = shalt.err (!%p4312_p11)
}
 0x541   :  { %3141 = dma.vmem_to_hbm [thread:$0]  %s3139_s29, 128, %s4501_s7, [#allocation4]  }
 0x542   :  { %4322 = dma.done.wait [#allocation4], 128  }
 0x543   :  { %4323 = vsyncadd [#allocation4], 4294967168 }
 0x544   :  { %3145 = vsyncpa [#allocation3], 1 }
 0x545   :  { %3146 = vsyncpa [#allocation6], 1 }
 0x546   :  { %3147 = vsyncpa [#allocation9], 1 }
 0x547   :  { %3148 = vsyncpa [#allocation4], 1 }

</bundles_post_ra>
